<compile_context>
chip_gen: v7x
topology: tpu7x:2x2x1
jax: 0.10.0
libtpu: 0.0.40
codegen_flags: <defaults>
</compile_context>

<pallas_src>
import functools

import jax
import jax.numpy as jnp
from jax.experimental import pallas as pl
from jax.experimental.pallas import tpu as pltpu


# ---------------------------------------------------------------------------
# Fused Pallas kernel
# ---------------------------------------------------------------------------
def _segformer_head_kernel(n_coarse, combine_first, use_bf16, *refs):
    # refs layout:
    #   x0_ref,
    #   [xc_ref, wh_ref, ww_ref] * n_coarse,
    #   w_comb_ref for x0 + each combine-last coarse stage,
    #   shift_ref, w_pred_ref, b_pred_ref,
    #   o_ref
    idx = 0
    x0_ref = refs[idx]; idx += 1
    coarse = []
    for _ in range(n_coarse):
        coarse.append(tuple(refs[idx:idx + 3])); idx += 3
    n_cl = 1 + sum(1 for f in combine_first if not f)
    w_comb_refs = list(refs[idx:idx + n_cl]); idx += n_cl
    shift_ref, w_pred_ref, b_pred_ref = refs[idx:idx + 3]; idx += 3
    o_ref = refs[idx]

    _, th, W0, C0 = x0_ref.shape

    def mxu(a):
        # bf16 MXU inputs, f32 accumulation (review item 3); no-op for exact f32.
        return a.astype(jnp.bfloat16) if use_bf16 else a

    # Finest stage: per-pixel channel combine (folded proj@fuse*bn) on the MXU.
    x0 = x0_ref[0].reshape(th * W0, C0)
    acc = jnp.dot(mxu(x0), w_comb_refs[0][...],
                  preferred_element_type=jnp.float32)          # (th*W0, E) f32

    cl = 1
    for s in range(n_coarse):
        xc_ref, wh_ref, ww_ref = coarse[s]
        xc = xc_ref[0]                           # (w_i, h_i, cs)  W-major, resident
        w_i, h_i, cs = xc.shape
        wh = wh_ref[...]                         # (th, h_i)  rows of this tile
        ww = ww_ref[...]                         # (W0, w_i)

        # Row interpolation (small; batched over the coarse-W axis).
        wh_b = jnp.broadcast_to(wh[None], (w_i, th, h_i))
        y = jnp.einsum("wth,whc->wtc", wh_b, xc,
                       preferred_element_type=jnp.float32)     # (w_i, th, cs)
        y = mxu(jnp.transpose(y, (1, 0, 2)))                   # (th, w_i, cs)

        # Column interpolation (the big interp matmul, M = W0 per batch row).
        ww_b = jnp.broadcast_to(ww[None], (th, W0, w_i))
        u = jnp.einsum("tWw,twc->tWc", ww_b, y,
                       preferred_element_type=jnp.float32)     # (th, W0, cs)
        u2d = u.reshape(th * W0, cs)

        if combine_first[s]:
            # proj+fuse+BN already folded into the coarse features (cs == E).
            acc = acc + u2d
        else:
            acc = acc + jnp.dot(mxu(u2d), w_comb_refs[cl][...],
                                preferred_element_type=jnp.float32)
            cl += 1

    # Folded conv biases + eval BatchNorm shift, ReLU; dropout = identity (eval).
    acc = jnp.maximum(acc + shift_ref[...], 0.0)

    # linear_pred against 128-lane padded weights -> unmasked, lane-dense stores.
    out = jnp.dot(mxu(acc), w_pred_ref[...], preferred_element_type=jnp.float32)
    out = out + b_pred_ref[...]
    o_ref[...] = out.reshape(1, th, W0, out.shape[-1]).astype(o_ref.dtype)


# ---------------------------------------------------------------------------
# Generation-aware tiling heuristics (review items 4-7)
# ---------------------------------------------------------------------------
def _tpu_tuning():
    """Returns (vmem_limit_bytes or None, target output pixels per tile)."""
    try:
        kind = jax.devices()[0].device_kind.lower()
    except Exception:
        kind = ""
    if "v5" in kind or "v6" in kind:
        # 128 MiB VMEM parts: big tiles amortize the per-grid-step overhead.
        return 80 << 20, 8192
    if "v7" in kind or "7x" in kind:
        # v7x: 64 MiB VMEM per TC -> tighter budget, smaller tiles.
        return 44 << 20, 2048
    return None, 2048            # unknown: conservative, compiler-default VMEM


def _choose_tile_h(H0, W0, N, target_px):
    cap = max(8, (target_px // max(W0, 1)) // 8 * 8)
    if H0 <= 8 or H0 % 8 != 0:
        return H0
    tile_h = 8
    for t in range(min(cap, H0), 7, -8):      # largest multiple-of-8 divisor <= cap
        if H0 % t == 0:
            tile_h = t
            break
    # Guarantee >= 2 grid points so both TensorCores (v7x) get work when N == 1.
    if N * (H0 // tile_h) < 2:
        for t in range((H0 // 2) // 8 * 8, 7, -8):
            if H0 % t == 0:
                tile_h = t
                break
    return tile_h


# ---------------------------------------------------------------------------
# pallas_call wrapper
# ---------------------------------------------------------------------------
def segformer_head_fused(x0_nhwc, coarse_nwhc, wh_mats, ww_mats, w_combs_cl,
                         shift, w_pred_pad, b_pred_pad, *, combine_first,
                         use_bf16, tile_h=None, out_dtype=jnp.float32,
                         vmem_limit_bytes=None):
    N, H0, W0, C0 = x0_nhwc.shape
    E = shift.shape[0]
    Cpad = w_pred_pad.shape[1]
    n_coarse = len(coarse_nwhc)

    vmem_default, target_px = _tpu_tuning()
    if tile_h is None:
        tile_h = _choose_tile_h(H0, W0, N, target_px)
    assert tile_h == H0 or (tile_h % 8 == 0 and H0 % tile_h == 0), \
        "tile_h must equal H0 or be a multiple of 8 that divides H0"
    if vmem_limit_bytes is None:
        vmem_limit_bytes = vmem_default

    grid = (N, pl.cdiv(H0, tile_h))

    in_specs = [pl.BlockSpec((1, tile_h, W0, C0), lambda n, h: (n, h, 0, 0))]
    operands = [x0_nhwc]
    for xc, wh, ww in zip(coarse_nwhc, wh_mats, ww_mats):
        _, w_i, h_i, cs = xc.shape
        in_specs += [
            pl.BlockSpec((1, w_i, h_i, cs), lambda n, h: (n, 0, 0, 0)),  # resident
            pl.BlockSpec((tile_h, h_i), lambda n, h: (h, 0)),
            pl.BlockSpec((W0, w_i), lambda n, h: (0, 0)),
        ]
        operands += [xc, wh, ww]
    for w in w_combs_cl:
        in_specs.append(pl.BlockSpec(w.shape, lambda n, h: (0, 0)))
        operands.append(w)
    in_specs += [
        pl.BlockSpec((1, E), lambda n, h: (0, 0)),
        pl.BlockSpec((E, Cpad), lambda n, h: (0, 0)),
        pl.BlockSpec((1, Cpad), lambda n, h: (0, 0)),
    ]
    operands += [shift.reshape(1, E), w_pred_pad, b_pred_pad.reshape(1, Cpad)]

    return pl.pallas_call(
        functools.partial(_segformer_head_kernel, n_coarse,
                          tuple(combine_first), use_bf16),
        out_shape=jax.ShapeDtypeStruct((N, H0, W0, Cpad), out_dtype),
        grid_spec=pltpu.PrefetchScalarGridSpec(
            num_scalar_prefetch=0,
            grid=grid,
            in_specs=in_specs,
            out_specs=pl.BlockSpec((1, tile_h, W0, Cpad),
                                   lambda n, h: (n, h, 0, 0)),
        ),
        compiler_params=pltpu.CompilerParams(
            dimension_semantics=("parallel", "parallel"),
            vmem_limit_bytes=vmem_limit_bytes,
        ),
    )(*operands)


# ---------------------------------------------------------------------------
# Glue (plain JAX): interp matrices, weight folding, layout plumbing, params
# ---------------------------------------------------------------------------
def _interp_matrix(out_size, in_size):
    """PyTorch F.interpolate(mode='bilinear', align_corners=False) as a matrix."""
    dst = jnp.arange(out_size, dtype=jnp.float32)
    scale = in_size / out_size
    src = jnp.clip((dst + 0.5) * scale - 0.5, 0.0, float(in_size - 1))
    lo = jnp.floor(src).astype(jnp.int32)
    hi = jnp.minimum(lo + 1, in_size - 1)
    frac = src - lo.astype(jnp.float32)
    rows = jnp.arange(out_size)
    W = jnp.zeros((out_size, in_size), jnp.float32)
    W = W.at[rows, lo].add(1.0 - frac)
    W = W.at[rows, hi].add(frac)
    return W


def fold_params(params):
    """Fold proj + linear_fuse + eval-BN scale; fold biases into one shift.

    Also pads linear_pred to a multiple of 128 output lanes (lane-dense stores).
    """
    w_fuse = params["w_fuse"]
    bn_scale, bn_shift = params["bn_scale"], params["bn_shift"]
    E = w_fuse.shape[1]
    n_stages = len(params["proj"])
    w_combs = []
    bias = jnp.zeros((E,), jnp.float32)
    for i, (w, b) in enumerate(params["proj"]):
        # torch.cat(ups[::-1], 1): stage i occupies rows [(S-1-i)*E, (S-i)*E)
        wf_i = w_fuse[(n_stages - 1 - i) * E:(n_stages - i) * E, :]
        w_combs.append((w @ wf_i) * bn_scale[None, :])
        bias = bias + b @ wf_i
    shift = bias * bn_scale + bn_shift
    num_classes = params["w_pred"].shape[1]
    cpad = 128 * pl.cdiv(num_classes, 128)
    w_pred_pad = jnp.pad(params["w_pred"], ((0, 0), (0, cpad - num_classes)))
    b_pred_pad = jnp.pad(params["b_pred"], ((0, cpad - num_classes),))
    return w_combs, shift, w_pred_pad, b_pred_pad, num_classes


def init_params(key, in_channels, num_classes, embed_dim):
    n = len(in_channels)
    keys = jax.random.split(key, 2 * n + 3)
    proj = []
    for i, c in enumerate(in_channels):
        w = jax.random.normal(keys[2 * i], (c, embed_dim), jnp.float32) / jnp.sqrt(c)
        b = 0.01 * jax.random.normal(keys[2 * i + 1], (embed_dim,), jnp.float32)
        proj.append((w, b))
    # linear_fuse: kaiming_normal_ fan_out / relu -> std = sqrt(2 / embed_dim)
    w_fuse = jax.random.normal(keys[2 * n], (embed_dim * n, embed_dim),
                               jnp.float32) * jnp.sqrt(2.0 / embed_dim)
    # BatchNorm2d (eval): weight=1, bias=0, running_mean=0, running_var=1
    eps = 1e-5
    gamma = jnp.ones((embed_dim,), jnp.float32)
    beta = jnp.zeros((embed_dim,), jnp.float32)
    running_mean = jnp.zeros((embed_dim,), jnp.float32)
    running_var = jnp.ones((embed_dim,), jnp.float32)
    bn_scale = gamma / jnp.sqrt(running_var + eps)
    bn_shift = beta - running_mean * bn_scale
    w_pred = jax.random.normal(keys[2 * n + 1], (embed_dim, num_classes),
                               jnp.float32) / jnp.sqrt(embed_dim)
    b_pred = 0.01 * jax.random.normal(keys[2 * n + 2], (num_classes,), jnp.float32)
    return dict(proj=proj, w_fuse=w_fuse, bn_scale=bn_scale, bn_shift=bn_shift,
                w_pred=w_pred, b_pred=b_pred)


def segformer_head_forward(xs_nchw, params, *, tile_h=None, use_bf16=True,
                           out_dtype=jnp.float32):
    """xs_nchw: list of NCHW feature maps (x[0] is the finest resolution)."""
    x0 = xs_nchw[0]
    N, _, H0, W0 = x0.shape
    E = params["w_fuse"].shape[1]
    w_combs, shift, w_pred_pad, b_pred_pad, num_classes = fold_params(params)
    feat_dtype = jnp.bfloat16 if use_bf16 else jnp.float32

    x0_nhwc = jnp.transpose(x0, (0, 2, 3, 1)).astype(feat_dtype)

    coarse, wh_mats, ww_mats, combine_first = [], [], [], []
    w_combs_cl = [w_combs[0].astype(feat_dtype)]     # finest stage is combine-last
    for s, xi in enumerate(xs_nchw[1:], start=1):
        _, C_i, h_i, w_i = xi.shape
        x_nhwc = jnp.transpose(xi, (0, 2, 3, 1))            # (N, h, w, C)
        # Combine-first iff it reduces total MXU work (review item 2).
        cf = (w_i * E * (C_i + W0)) < (W0 * C_i * (w_i + E))
        if cf:
            # Fold proj+fuse+BN-scale into the coarse features (tiny per-batch op).
            z = jnp.einsum("nhwc,ce->nhwe", x_nhwc, w_combs[s])
        else:
            z = x_nhwc
            w_combs_cl.append(w_combs[s].astype(feat_dtype))
        coarse.append(jnp.transpose(z, (0, 2, 1, 3)).astype(feat_dtype))  # (N,w,h,c)
        wh_mats.append(_interp_matrix(H0, h_i).astype(feat_dtype))
        ww_mats.append(_interp_matrix(W0, w_i).astype(feat_dtype))
        combine_first.append(cf)

    out = segformer_head_fused(
        x0_nhwc, coarse, wh_mats, ww_mats, w_combs_cl, shift,
        w_pred_pad.astype(feat_dtype), b_pred_pad,
        combine_first=tuple(combine_first), use_bf16=use_bf16,
        tile_h=tile_h, out_dtype=out_dtype)
    out = out[..., :num_classes]                      # drop lane padding
    return jnp.transpose(out, (0, 3, 1, 2))           # back to NCHW (PyTorch layout)


def reference_forward(xs_nchw, params):
    """Pure-JAX reference mirroring the PyTorch module (eval mode)."""
    H0, W0 = xs_nchw[0].shape[2], xs_nchw[0].shape[3]
    unify = []
    for xi, (w, b) in zip(xs_nchw, params["proj"]):
        x_nhwc = jnp.transpose(xi, (0, 2, 3, 1))
        unify.append(jnp.einsum("nhwc,ce->nhwe", x_nhwc, w) + b)
    ups = [unify[0]]
    for s in unify[1:]:
        Wh = _interp_matrix(H0, s.shape[1])
        Ww = _interp_matrix(W0, s.shape[2])
        ups.append(jnp.einsum("nhwc,Hh,Ww->nHWc", s, Wh, Ww))
    concat = jnp.concatenate(ups[::-1], axis=-1)
    h = jnp.einsum("nhwc,cd->nhwd", concat, params["w_fuse"])
    h = h * params["bn_scale"] + params["bn_shift"]
    h = jnp.maximum(h, 0.0)
    y = jnp.einsum("nhwd,dk->nhwk", h, params["w_pred"]) + params["b_pred"]
    return jnp.transpose(y, (0, 3, 1, 2))


if __name__ == "__main__":
    key = jax.random.PRNGKey(0)
    in_channels = [4, 8, 16, 32]     # per-stage channels (x[0] finest)
    spatial = [16, 8, 4, 2]          # per-stage H=W
    num_classes = 8
    embed_dim = 32
    N = 2

    k_in, k_p = jax.random.split(key)
    ks = jax.random.split(k_in, len(in_channels))
    xs = [
        jax.random.normal(ks[i], (N, in_channels[i], spatial[i], spatial[i]),
                          jnp.float32)
        for i in range(len(in_channels))
    ]
    params = init_params(k_p, in_channels, num_classes, embed_dim)

    ref = reference_forward(xs, params)

    # Exact-f32 path (tile_h=8 -> grid (2, 2) exercises the tiling/pipelining and
    # both the combine-first and combine-last stage code paths).
    out_f32 = segformer_head_forward(xs, params, tile_h=8, use_bf16=False)
    out_f32 = jax.block_until_ready(out_f32)
    assert out_f32.shape == (N, num_classes, spatial[0], spatial[0]), out_f32.shape
    assert jnp.allclose(out_f32, ref, atol=2e-4, rtol=2e-4), \
        "f32 path mismatch vs JAX reference"

    # Default fast path: bf16 MXU inputs, f32 accumulation (review item 3).
    out_bf16 = segformer_head_forward(xs, params, tile_h=8)
    out_bf16 = jax.block_until_ready(out_bf16)
    assert out_bf16.shape == (N, num_classes, spatial[0], spatial[0])
    scale = float(jnp.max(jnp.abs(ref)))
    max_err = float(jnp.max(jnp.abs(out_bf16 - ref)))
    assert max_err <= 0.05 * scale + 1e-3, \
        f"bf16 path error too large: {max_err} (output scale {scale})"

    print("KERNEL_OK")
</pallas_src>

<mosaic_0001>
module attributes {stable_mosaic.version = 11 : i64} {
  func.func @_segformer_head_kernel(%arg0: i32, %arg1: i32, %arg2: memref<1x8x16x4xf32, #tpu.memory_space<vmem>>, %arg3: memref<1x8x8x8xf32, #tpu.memory_space<vmem>>, %arg4: memref<8x8xf32, #tpu.memory_space<vmem>>, %arg5: memref<16x8xf32, #tpu.memory_space<vmem>>, %arg6: memref<1x4x4x32xf32, #tpu.memory_space<vmem>>, %arg7: memref<8x4xf32, #tpu.memory_space<vmem>>, %arg8: memref<16x4xf32, #tpu.memory_space<vmem>>, %arg9: memref<1x2x2x32xf32, #tpu.memory_space<vmem>>, %arg10: memref<8x2xf32, #tpu.memory_space<vmem>>, %arg11: memref<16x2xf32, #tpu.memory_space<vmem>>, %arg12: memref<4x32xf32, #tpu.memory_space<vmem>>, %arg13: memref<8x32xf32, #tpu.memory_space<vmem>>, %arg14: memref<1x32xf32, #tpu.memory_space<vmem>>, %arg15: memref<32x128xf32, #tpu.memory_space<vmem>>, %arg16: memref<1x128xf32, #tpu.memory_space<vmem>>, %arg17: memref<1x8x16x128xf32, #tpu.memory_space<vmem>>) attributes {dimension_semantics = [#tpu.dimension_semantics<parallel>, #tpu.dimension_semantics<parallel>], iteration_bounds = array<i64: 2, 2>, scalar_prefetch = 0 : i64, scratch_operands = 0 : i64, tpu.core_type = #tpu.core_type<tc>, window_params = [{transform_indices = @transform_0, window_bounds = array<i64: 1, 8, 16, 4>}, {transform_indices = @transform_1, window_bounds = array<i64: 1, 8, 8, 8>}, {transform_indices = @transform_2, window_bounds = array<i64: 8, 8>}, {pipeline_mode = #tpu.pipeline_mode<synchronous>, transform_indices = @transform_3, window_bounds = array<i64: 16, 8>}, {transform_indices = @transform_4, window_bounds = array<i64: 1, 4, 4, 32>}, {transform_indices = @transform_5, window_bounds = array<i64: 8, 4>}, {pipeline_mode = #tpu.pipeline_mode<synchronous>, transform_indices = @transform_6, window_bounds = array<i64: 16, 4>}, {transform_indices = @transform_7, window_bounds = array<i64: 1, 2, 2, 32>}, {transform_indices = @transform_8, window_bounds = array<i64: 8, 2>}, {pipeline_mode = #tpu.pipeline_mode<synchronous>, transform_indices = @transform_9, window_bounds = array<i64: 16, 2>}, {pipeline_mode = #tpu.pipeline_mode<synchronous>, transform_indices = @transform_10, window_bounds = array<i64: 4, 32>}, {pipeline_mode = #tpu.pipeline_mode<synchronous>, transform_indices = @transform_11, window_bounds = array<i64: 8, 32>}, {pipeline_mode = #tpu.pipeline_mode<synchronous>, transform_indices = @transform_12, window_bounds = array<i64: 1, 32>}, {pipeline_mode = #tpu.pipeline_mode<synchronous>, transform_indices = @transform_13, window_bounds = array<i64: 32, 128>}, {pipeline_mode = #tpu.pipeline_mode<synchronous>, transform_indices = @transform_14, window_bounds = array<i64: 1, 128>}, {transform_indices = @transform_15, window_bounds = array<i64: 1, 8, 16, 128>}]} {
    %c0 = arith.constant 0 : index
    %c0_0 = arith.constant 0 : index
    %c0_1 = arith.constant 0 : index
    %c0_2 = arith.constant 0 : index
    %0 = vector.load %arg2[%c0, %c0_0, %c0_1, %c0_2] : memref<1x8x16x4xf32, #tpu.memory_space<vmem>>, vector<1x8x16x4xf32>
    %1 = vector.shape_cast %0 : vector<1x8x16x4xf32> to vector<8x16x4xf32>
    %2 = vector.shape_cast %1 : vector<8x16x4xf32> to vector<128x4xf32>
    %c0_3 = arith.constant 0 : index
    %c0_4 = arith.constant 0 : index
    %3 = vector.load %arg12[%c0_3, %c0_4] : memref<4x32xf32, #tpu.memory_space<vmem>>, vector<4x32xf32>
    %cst = arith.constant dense<0.000000e+00> : vector<128x32xf32>
    %4 = tpu.matmul %2, %3, %cst {dimension_numbers = #tpu.dot_dimension_numbers<[1], [0], [0], [1], [0, 0, 1, 1], [], []>} : vector<128x4xf32>, vector<4x32xf32>, vector<128x32xf32> -> vector<128x32xf32>
    %c0_5 = arith.constant 0 : index
    %c0_6 = arith.constant 0 : index
    %c0_7 = arith.constant 0 : index
    %c0_8 = arith.constant 0 : index
    %5 = vector.load %arg3[%c0_5, %c0_6, %c0_7, %c0_8] : memref<1x8x8x8xf32, #tpu.memory_space<vmem>>, vector<1x8x8x8xf32>
    %6 = vector.shape_cast %5 : vector<1x8x8x8xf32> to vector<8x8x8xf32>
    %c0_9 = arith.constant 0 : index
    %c0_10 = arith.constant 0 : index
    %7 = vector.load %arg4[%c0_9, %c0_10] : memref<8x8xf32, #tpu.memory_space<vmem>>, vector<8x8xf32>
    %c0_11 = arith.constant 0 : index
    %c0_12 = arith.constant 0 : index
    %8 = vector.load %arg5[%c0_11, %c0_12] : memref<16x8xf32, #tpu.memory_space<vmem>>, vector<16x8xf32>
    %9 = vector.shape_cast %7 : vector<8x8xf32> to vector<1x8x8xf32>
    %10 = vector.shape_cast %9 : vector<1x8x8xf32> to vector<1x8x8xf32>
    %11 = vector.broadcast %10 : vector<1x8x8xf32> to vector<8x8x8xf32>
    "tpu.trace_start"() <{level = 10 : i32, message = "wth,whc->wtc"}> : () -> ()
    %cst_13 = arith.constant dense<0.000000e+00> : vector<8x8x8xf32>
    %12 = tpu.matmul %11, %6, %cst_13 {dimension_numbers = #tpu.dot_dimension_numbers<[2], [1], [1], [2], [0, 0, 0, 1, 1, 2], [0], [0]>} : vector<8x8x8xf32>, vector<8x8x8xf32>, vector<8x8x8xf32> -> vector<8x8x8xf32>
    "tpu.trace_stop"() : () -> ()
    %13 = tpu.transpose %12, [1, 0, 2] : vector<8x8x8xf32> -> vector<8x8x8xf32>
    %14 = vector.shape_cast %8 : vector<16x8xf32> to vector<1x16x8xf32>
    %15 = vector.shape_cast %14 : vector<1x16x8xf32> to vector<1x16x8xf32>
    %16 = vector.broadcast %15 : vector<1x16x8xf32> to vector<8x16x8xf32>
    "tpu.trace_start"() <{level = 10 : i32, message = "tWw,twc->tWc"}> : () -> ()
    %cst_14 = arith.constant dense<0.000000e+00> : vector<8x16x8xf32>
    %17 = tpu.matmul %16, %13, %cst_14 {dimension_numbers = #tpu.dot_dimension_numbers<[2], [1], [1], [2], [0, 0, 0, 1, 1, 2], [0], [0]>} : vector<8x16x8xf32>, vector<8x8x8xf32>, vector<8x16x8xf32> -> vector<8x16x8xf32>
    "tpu.trace_stop"() : () -> ()
    %18 = vector.shape_cast %17 : vector<8x16x8xf32> to vector<128x8xf32>
    %c0_15 = arith.constant 0 : index
    %c0_16 = arith.constant 0 : index
    %19 = vector.load %arg13[%c0_15, %c0_16] : memref<8x32xf32, #tpu.memory_space<vmem>>, vector<8x32xf32>
    %cst_17 = arith.constant dense<0.000000e+00> : vector<128x32xf32>
    %20 = tpu.matmul %18, %19, %cst_17 {dimension_numbers = #tpu.dot_dimension_numbers<[1], [0], [0], [1], [0, 0, 1, 1], [], []>} : vector<128x8xf32>, vector<8x32xf32>, vector<128x32xf32> -> vector<128x32xf32>
    %21 = arith.addf %4, %20 : vector<128x32xf32>
    %c0_18 = arith.constant 0 : index
    %c0_19 = arith.constant 0 : index
    %c0_20 = arith.constant 0 : index
    %c0_21 = arith.constant 0 : index
    %22 = vector.load %arg6[%c0_18, %c0_19, %c0_20, %c0_21] : memref<1x4x4x32xf32, #tpu.memory_space<vmem>>, vector<1x4x4x32xf32>
    %23 = vector.shape_cast %22 : vector<1x4x4x32xf32> to vector<4x4x32xf32>
    %c0_22 = arith.constant 0 : index
    %c0_23 = arith.constant 0 : index
    %24 = vector.load %arg7[%c0_22, %c0_23] : memref<8x4xf32, #tpu.memory_space<vmem>>, vector<8x4xf32>
    %c0_24 = arith.constant 0 : index
    %c0_25 = arith.constant 0 : index
    %25 = vector.load %arg8[%c0_24, %c0_25] : memref<16x4xf32, #tpu.memory_space<vmem>>, vector<16x4xf32>
    %26 = vector.shape_cast %24 : vector<8x4xf32> to vector<1x8x4xf32>
    %27 = vector.shape_cast %26 : vector<1x8x4xf32> to vector<1x8x4xf32>
    %28 = vector.broadcast %27 : vector<1x8x4xf32> to vector<4x8x4xf32>
    "tpu.trace_start"() <{level = 10 : i32, message = "wth,whc->wtc"}> : () -> ()
    %cst_26 = arith.constant dense<0.000000e+00> : vector<4x8x32xf32>
    %29 = tpu.matmul %28, %23, %cst_26 {dimension_numbers = #tpu.dot_dimension_numbers<[2], [1], [1], [2], [0, 0, 0, 1, 1, 2], [0], [0]>} : vector<4x8x4xf32>, vector<4x4x32xf32>, vector<4x8x32xf32> -> vector<4x8x32xf32>
    "tpu.trace_stop"() : () -> ()
    %30 = tpu.transpose %29, [1, 0, 2] : vector<4x8x32xf32> -> vector<8x4x32xf32>
    %31 = vector.shape_cast %25 : vector<16x4xf32> to vector<1x16x4xf32>
    %32 = vector.shape_cast %31 : vector<1x16x4xf32> to vector<1x16x4xf32>
    %33 = vector.broadcast %32 : vector<1x16x4xf32> to vector<8x16x4xf32>
    "tpu.trace_start"() <{level = 10 : i32, message = "tWw,twc->tWc"}> : () -> ()
    %cst_27 = arith.constant dense<0.000000e+00> : vector<8x16x32xf32>
    %34 = tpu.matmul %33, %30, %cst_27 {dimension_numbers = #tpu.dot_dimension_numbers<[2], [1], [1], [2], [0, 0, 0, 1, 1, 2], [0], [0]>} : vector<8x16x4xf32>, vector<8x4x32xf32>, vector<8x16x32xf32> -> vector<8x16x32xf32>
    "tpu.trace_stop"() : () -> ()
    %35 = vector.shape_cast %34 : vector<8x16x32xf32> to vector<128x32xf32>
    %36 = arith.addf %21, %35 : vector<128x32xf32>
    %c0_28 = arith.constant 0 : index
    %c0_29 = arith.constant 0 : index
    %c0_30 = arith.constant 0 : index
    %c0_31 = arith.constant 0 : index
    %37 = vector.load %arg9[%c0_28, %c0_29, %c0_30, %c0_31] : memref<1x2x2x32xf32, #tpu.memory_space<vmem>>, vector<1x2x2x32xf32>
    %38 = vector.shape_cast %37 : vector<1x2x2x32xf32> to vector<2x2x32xf32>
    %c0_32 = arith.constant 0 : index
    %c0_33 = arith.constant 0 : index
    %39 = vector.load %arg10[%c0_32, %c0_33] : memref<8x2xf32, #tpu.memory_space<vmem>>, vector<8x2xf32>
    %c0_34 = arith.constant 0 : index
    %c0_35 = arith.constant 0 : index
    %40 = vector.load %arg11[%c0_34, %c0_35] : memref<16x2xf32, #tpu.memory_space<vmem>>, vector<16x2xf32>
    %41 = vector.shape_cast %39 : vector<8x2xf32> to vector<1x8x2xf32>
    %42 = vector.shape_cast %41 : vector<1x8x2xf32> to vector<1x8x2xf32>
    %43 = vector.broadcast %42 : vector<1x8x2xf32> to vector<2x8x2xf32>
    "tpu.trace_start"() <{level = 10 : i32, message = "wth,whc->wtc"}> : () -> ()
    %cst_36 = arith.constant dense<0.000000e+00> : vector<2x8x32xf32>
    %44 = tpu.matmul %43, %38, %cst_36 {dimension_numbers = #tpu.dot_dimension_numbers<[2], [1], [1], [2], [0, 0, 0, 1, 1, 2], [0], [0]>} : vector<2x8x2xf32>, vector<2x2x32xf32>, vector<2x8x32xf32> -> vector<2x8x32xf32>
    "tpu.trace_stop"() : () -> ()
    %45 = tpu.transpose %44, [1, 0, 2] : vector<2x8x32xf32> -> vector<8x2x32xf32>
    %46 = vector.shape_cast %40 : vector<16x2xf32> to vector<1x16x2xf32>
    %47 = vector.shape_cast %46 : vector<1x16x2xf32> to vector<1x16x2xf32>
    %48 = vector.broadcast %47 : vector<1x16x2xf32> to vector<8x16x2xf32>
    "tpu.trace_start"() <{level = 10 : i32, message = "tWw,twc->tWc"}> : () -> ()
    %cst_37 = arith.constant dense<0.000000e+00> : vector<8x16x32xf32>
    %49 = tpu.matmul %48, %45, %cst_37 {dimension_numbers = #tpu.dot_dimension_numbers<[2], [1], [1], [2], [0, 0, 0, 1, 1, 2], [0], [0]>} : vector<8x16x2xf32>, vector<8x2x32xf32>, vector<8x16x32xf32> -> vector<8x16x32xf32>
    "tpu.trace_stop"() : () -> ()
    %50 = vector.shape_cast %49 : vector<8x16x32xf32> to vector<128x32xf32>
    %51 = arith.addf %36, %50 : vector<128x32xf32>
    %c0_38 = arith.constant 0 : index
    %c0_39 = arith.constant 0 : index
    %52 = vector.load %arg14[%c0_38, %c0_39] : memref<1x32xf32, #tpu.memory_space<vmem>>, vector<1x32xf32>
    %53 = vector.broadcast %52 : vector<1x32xf32> to vector<128x32xf32>
    %54 = arith.addf %51, %53 : vector<128x32xf32>
    %cst_40 = arith.constant 0.000000e+00 : f32
    %55 = vector.broadcast %cst_40 : f32 to vector<128x32xf32>
    %56 = arith.maximumf %54, %55 : vector<128x32xf32>
    %c0_41 = arith.constant 0 : index
    %c0_42 = arith.constant 0 : index
    %57 = vector.load %arg15[%c0_41, %c0_42] : memref<32x128xf32, #tpu.memory_space<vmem>>, vector<32x128xf32>
    %cst_43 = arith.constant dense<0.000000e+00> : vector<128x128xf32>
    %58 = tpu.matmul %56, %57, %cst_43 {dimension_numbers = #tpu.dot_dimension_numbers<[1], [0], [0], [1], [0, 0, 1, 1], [], []>} : vector<128x32xf32>, vector<32x128xf32>, vector<128x128xf32> -> vector<128x128xf32>
    %c0_44 = arith.constant 0 : index
    %c0_45 = arith.constant 0 : index
    %59 = vector.load %arg16[%c0_44, %c0_45] : memref<1x128xf32, #tpu.memory_space<vmem>>, vector<1x128xf32>
    %60 = vector.broadcast %59 : vector<1x128xf32> to vector<128x128xf32>
    %61 = arith.addf %58, %60 : vector<128x128xf32>
    %62 = vector.shape_cast %61 : vector<128x128xf32> to vector<1x8x16x128xf32>
    %c0_46 = arith.constant 0 : index
    %c0_47 = arith.constant 0 : index
    %c0_48 = arith.constant 0 : index
    %c0_49 = arith.constant 0 : index
    %63 = vector.load %arg17[%c0_46, %c0_47, %c0_48, %c0_49] : memref<1x8x16x128xf32, #tpu.memory_space<vmem>>, vector<1x8x16x128xf32>
    tpu.vector_store %arg17[%c0_46, %c0_47, %c0_48, %c0_49], %62 {strides = array<i32>} : memref<1x8x16x128xf32, #tpu.memory_space<vmem>>, vector<1x8x16x128xf32>,
    return
  }
  func.func @transform_0(%arg0: i32, %arg1: i32) -> (i32, i32, i32, i32) {
    %c0_i32 = arith.constant 0 : i32
    %c0_i32_0 = arith.constant 0 : i32
    %c0_i32_1 = arith.constant 0 : i32
    return %arg0, %arg1, %c0_i32, %c0_i32_0 : i32, i32, i32, i32
  }
  func.func @transform_1(%arg0: i32, %arg1: i32) -> (i32, i32, i32, i32) {
    %c0_i32 = arith.constant 0 : i32
    %c0_i32_0 = arith.constant 0 : i32
    %c0_i32_1 = arith.constant 0 : i32
    %c0_i32_2 = arith.constant 0 : i32
    return %arg0, %c0_i32, %c0_i32_0, %c0_i32_1 : i32, i32, i32, i32
  }
  func.func @transform_2(%arg0: i32, %arg1: i32) -> (i32, i32) {
    %c0_i32 = arith.constant 0 : i32
    %c0_i32_0 = arith.constant 0 : i32
    return %arg1, %c0_i32 : i32, i32
  }
  func.func @transform_3(%arg0: i32, %arg1: i32) -> (i32, i32) {
    %c0_i32 = arith.constant 0 : i32
    %c0_i32_0 = arith.constant 0 : i32
    %c0_i32_1 = arith.constant 0 : i32
    return %c0_i32, %c0_i32_0 : i32, i32
  }
  func.func @transform_4(%arg0: i32, %arg1: i32) -> (i32, i32, i32, i32) {
    %c0_i32 = arith.constant 0 : i32
    %c0_i32_0 = arith.constant 0 : i32
    %c0_i32_1 = arith.constant 0 : i32
    %c0_i32_2 = arith.constant 0 : i32
    return %arg0, %c0_i32, %c0_i32_0, %c0_i32_1 : i32, i32, i32, i32
  }
  func.func @transform_5(%arg0: i32, %arg1: i32) -> (i32, i32) {
    %c0_i32 = arith.constant 0 : i32
    %c0_i32_0 = arith.constant 0 : i32
    return %arg1, %c0_i32 : i32, i32
  }
  func.func @transform_6(%arg0: i32, %arg1: i32) -> (i32, i32) {
    %c0_i32 = arith.constant 0 : i32
    %c0_i32_0 = arith.constant 0 : i32
    %c0_i32_1 = arith.constant 0 : i32
    return %c0_i32, %c0_i32_0 : i32, i32
  }
  func.func @transform_7(%arg0: i32, %arg1: i32) -> (i32, i32, i32, i32) {
    %c0_i32 = arith.constant 0 : i32
    %c0_i32_0 = arith.constant 0 : i32
    %c0_i32_1 = arith.constant 0 : i32
    %c0_i32_2 = arith.constant 0 : i32
    return %arg0, %c0_i32, %c0_i32_0, %c0_i32_1 : i32, i32, i32, i32
  }
  func.func @transform_8(%arg0: i32, %arg1: i32) -> (i32, i32) {
    %c0_i32 = arith.constant 0 : i32
    %c0_i32_0 = arith.constant 0 : i32
    return %arg1, %c0_i32 : i32, i32
  }
  func.func @transform_9(%arg0: i32, %arg1: i32) -> (i32, i32) {
    %c0_i32 = arith.constant 0 : i32
    %c0_i32_0 = arith.constant 0 : i32
    %c0_i32_1 = arith.constant 0 : i32
    return %c0_i32, %c0_i32_0 : i32, i32
  }
  func.func @transform_10(%arg0: i32, %arg1: i32) -> (i32, i32) {
    %c0_i32 = arith.constant 0 : i32
    %c0_i32_0 = arith.constant 0 : i32
    %c0_i32_1 = arith.constant 0 : i32
    return %c0_i32, %c0_i32_0 : i32, i32
  }
  func.func @transform_11(%arg0: i32, %arg1: i32) -> (i32, i32) {
    %c0_i32 = arith.constant 0 : i32
    %c0_i32_0 = arith.constant 0 : i32
    %c0_i32_1 = arith.constant 0 : i32
    return %c0_i32, %c0_i32_0 : i32, i32
  }
  func.func @transform_12(%arg0: i32, %arg1: i32) -> (i32, i32) {
    %c0_i32 = arith.constant 0 : i32
    %c0_i32_0 = arith.constant 0 : i32
    %c0_i32_1 = arith.constant 0 : i32
    return %c0_i32, %c0_i32_0 : i32, i32
  }
  func.func @transform_13(%arg0: i32, %arg1: i32) -> (i32, i32) {
    %c0_i32 = arith.constant 0 : i32
    %c0_i32_0 = arith.constant 0 : i32
    %c0_i32_1 = arith.constant 0 : i32
    return %c0_i32, %c0_i32_0 : i32, i32
  }
  func.func @transform_14(%arg0: i32, %arg1: i32) -> (i32, i32) {
    %c0_i32 = arith.constant 0 : i32
    %c0_i32_0 = arith.constant 0 : i32
    %c0_i32_1 = arith.constant 0 : i32
    return %c0_i32, %c0_i32_0 : i32, i32
  }
  func.func @transform_15(%arg0: i32, %arg1: i32) -> (i32, i32, i32, i32) {
    %c0_i32 = arith.constant 0 : i32
    %c0_i32_0 = arith.constant 0 : i32
    %c0_i32_1 = arith.constant 0 : i32
    return %arg0, %arg1, %c0_i32, %c0_i32_0 : i32, i32, i32, i32
  }
}

</mosaic_0001>

<bundles_post_ra>
// kernel: tpu_custom_call.1
= control target key start
LH: loop header
LB: loop body
LE: loop exit
PB: predicated region body
PF: predicated region fallthrough
CT: control target
= control target key end

     0   :  { %s6192_s0 = inlined_call_operand.vmem [shape: f32[2,16,16,4], index: 0, kind: input, shape index: {}]   ;;  %s6193_s1 = inlined_call_operand.vmem [shape: f32[2,8,8,8], index: 1, kind: input, shape index: {}]   ;;  %s6194_s2 = inlined_call_operand.vmem [shape: f32[16,8], index: 2, kind: input, shape index: {}]   ;;  %s6195_s3 = inlined_call_operand.vmem [shape: f32[16,8], index: 3, kind: input, shape index: {}]   ;;  %s6196_s4 = inlined_call_operand.vmem [shape: f32[2,4,4,32], index: 4, kind: input, shape index: {}]   ;;  %s6197_s5 = inlined_call_operand.vmem [shape: f32[16,4], index: 5, kind: input, shape index: {}]   ;;  %s6198_s6 = inlined_call_operand.vmem [shape: f32[16,4], index: 6, kind: input, shape index: {}]   ;;  %s6199_s7 = inlined_call_operand.vmem [shape: f32[2,2,2,32], index: 7, kind: input, shape index: {}]   ;;  %s6200_s8 = inlined_call_operand.vmem [shape: f32[16,2], index: 8, kind: input, shape index: {}]   ;;  %s6201_s9 = inlined_call_operand.vmem [shape: f32[16,2], index: 9, kind: input, shape index: {}]   ;;  %s6202_s10 = inlined_call_operand.vmem [shape: f32[4,32], index: 10, kind: input, shape index: {}]   ;;  %s6203_s11 = inlined_call_operand.vmem [shape: f32[8,32], index: 11, kind: input, shape index: {}]   ;;  %s6204_s12 = inlined_call_operand.vmem [shape: f32[1,32], index: 12, kind: input, shape index: {}]   ;;  %s6205_s13 = inlined_call_operand.vmem [shape: f32[32,128], index: 13, kind: input, shape index: {}]   ;;  %s6206_s14 = inlined_call_operand.vmem [shape: f32[1,128], index: 14, kind: input, shape index: {}]   ;;  %s6207_s15 = inlined_call_operand.hbm [shape: f32[2,16,16,128], index: 15, kind: output, shape index: {}]  }
   0x1   :  { %6212 = sst [smem:[#allocation8_spill]] %s6193_s1 }
   0x2   :  { %6213 = sst [smem:[#allocation9_spill]] %s6194_s2 }
   0x3   :  { %6214 = sst [smem:[#allocation10_spill]] %s6195_s3 }
   0x4   :  { %6215 = sst [smem:[#allocation11_spill]] %s6196_s4 }
   0x5   :  { %6216 = sst [smem:[#allocation12_spill]] %s6206_s14 }
   0x6   :  { %6217 = sst [smem:[#allocation13_spill]] %s6207_s15 }
   0x7   :  { %20 = vsyncpa [#allocation3], 0 }
   0x8   :  { %22 = vsyncpa [#allocation3 + $0x1], 0  ;;  %s5591_s18 = smov 0   ;;  %s5593_s19 = smov 0  }
   0x9   :  { %s5595_s20 = smov 0   ;;  %s5597_s21 = smov 0  }
   0xa   :  { %s5599_s22 = smov 0   ;;  %s5601_s23 = smov 0  }
   0xb   :  { %s5603_s24 = smov 0   ;;  %s5605_s25 = smov 0  }
   0xc LB: > { %6218 = sst [smem:[#allocation5_spill]] %s5498_s24  ;;  %s4682_s26 = sadd.s32 4294967295, %s5502_s25   ;;  %s5502_s25 = sphi %s5605_s25, %s28_s25   ;;  %s5498_s24 = sphi %s5603_s24, %s6231_s24   ;;  %s5494_s23 = sphi %s5601_s23, %s6236_s23   ;;  %s5490_s22 = sphi %s5599_s22, %s6229_s22   ;;  %s5486_s21 = sphi %s5597_s21, %s6235_s21   ;;  %s5482_s20 = sphi %s5595_s20, %s6234_s20   ;;  %s5478_s19 = sphi %s5593_s19, %s6233_s19   ;;  %s5474_s18 = sphi %s5591_s18, %s6232_s18  }
   0xd   : > { %s4683_s27 = sadd.s32 4294967294, %s5502_s25   ;;  %s37_s28 = sadd.s32 1, %s5494_s23 }
   0xe   : > { %p38_p0 = scmp.ge.s32.totalorder %s37_s28, 2  ;;  %s40_s29 = sadd.s32 1, %s5498_s24 }
   0xf   : > { %p411_p1 = scmp.ne.s32.totalorder %s5482_s20, %s5478_s19  ;;  %p412_p2 = scmp.eq.s32.totalorder %s4682_s26, 3 }
  0x10   : > { %s6238_s28 = smov (%p38_p0, %s37_s28), 0  ;;  %s6240_s29 = smov (!%p38_p0, %s40_s29), %s5498_s24 }
  0x11   : > { %6219 = sst [smem:[#allocation6_spill]] %s6238_s28  ;;  %s397_s30 = ssub.s32 %s5494_s23, %s6238_s28 }
  0x12   : > { %p5642_p3 = por %p412_p2, %p411_p1  ;;  %p42_p4 = scmp.ge.s32.totalorder %s6240_s29, 2 }
  0x13   : > { %p417_p5 = scmp.ne.s32.totalorder %s5478_s19, %s5474_s18  ;;  %p418_p6 = scmp.eq.s32.totalorder %s4683_s27, 3 }
  0x14   : > { %p4686_p7 = scmp.ge.s32.totalorder %s5502_s25, 1  ;;  %s6242_s29 = smov (%p42_p4, %s6240_s29), 0 }
  0x15   : > { %6221 = sst [smem:[#allocation7_spill]] %s6242_s29  ;;  %p5651_p8 = por %p418_p6, %p417_p5 }
  0x16   : > { %p519_p9 = scmp.lt.s32.totalorder %s5502_s25, 5  ;;  %s396_s26 = ssub.s32 %s5498_s24, %s6242_s29 }
  0x17   : > { %s401_s15 = sadd.s32 1, %s5482_s20  ;;  %s398_s14 = sor.u32 %s397_s30, %s396_s26 }
  0x18   : > { %p520_p10 = pnand %p4686_p7, %p519_p9  ;;  %p399_p11 = scmp.eq.s32.totalorder %s398_s14, 0 }
  0x19   : > { %p600_p12 = scmp.lt.s32.totalorder (!%p520_p10), %s5490_s22, 1  ;;  %v5504_v0 = vmov (!%p520_p10), 0.0   ;;  %vm5505_vm0 = vmmov (!%p520_p10), 0   ;;  %s6223_s1 = sld [smem:[#allocation8_spill]] (!%p520_p10)  ;;  %vm666_vm1 = vcmask (!%p520_p10), 64512   ;;  %v1235_v13 = vlaneseq (!%p520_p10) }
  0x1a   : > { %s5660_s28 = scalar_select %p399_p11, %s5482_s20, %s401_s15  }
  0x1b   : > { %523 = sbr.rel (%p520_p10) target bundleno = 1267 (0x4f3), region = 80  ;;  %5001 = vmatprep.subr.mxu0 (!%p520_p10), %v5504_v0  ;;  %5006 = vmatprep.subr.mxu1 (!%p520_p10), %v5504_v0  ;;  %p615_p13 = scmp.lt.s32.totalorder (!%p520_p10), %s5486_s21, 1  ;;  %v5506_v11 = vmov (!%p520_p10), 1983009808   ;;  %v1236_v15 = vshrl.u32 (!%p520_p10), %v1235_v13, 7  ;;  %vm2215_vm2 = vcmask (!%p520_p10), 1043456  }
  0x1c   : > { %5003 = vmatprep.mubr.msk.f32.mxu0 (!%p520_p10), %vm5505_vm0, %v5504_v0  ;;  %5008 = vmatprep.mubr.msk.f32.mxu1 (!%p520_p10), %vm5505_vm0, %v5504_v0  ;;  %s6224_s2 = sld [smem:[#allocation9_spill]] (!%p520_p10)  ;;  %s6225_s3 = sld [smem:[#allocation10_spill]] (!%p520_p10)  ;;  %v1233_v12 = vunpack.c.l.s4 (!%p520_p10), %v5506_v11  ;;  %v5507_v29 = vmov (!%p520_p10), 1934713408   ;;  %vm2166_vm3 = vcmask (!%p520_p10), 31744   ;;  %vm3389_vm4 = vcmask (!%p520_p10), 1041408  }
  0x1d   : > { %v1297_v30 = vunpack.c.l.s4 (!%p520_p10), %v5507_v29  ;;  %s6226_s4 = sld [smem:[#allocation11_spill]] (!%p520_p10)  ;;  %vm3385_vm5 = vcmask (!%p520_p10), 15360   ;;  %vm4298_vm6 = vcmask (!%p520_p10), 261120  }
  0x1e   : > { %v1234_v14 = vunpack.c.0.s8 (!%p520_p10), %v1233_v12 }
  0x1f   : > { %v1298_v43 = vunpack.c.0.s8 (!%p520_p10), %v1297_v30 }
  0x20   : > { %v5729_v20 = vsub.s32 (!%p520_p10), %v1234_v14, %v1236_v15 }
  0x21   : > { %v5735_v52 = vsub.s32 (!%p520_p10), %v1298_v43, %v1236_v15 }
  0x22   : > { %s5666_s27 = scalar_select %p600_p12, %s5490_s22, 1  ;;  %v5723_v10 = vld [vmem:[%s6225_s3] sm:$0xff]  ;;  %v665_v11 = vld [vmem:[%s6225_s3 + $0x8] sm:$0xff] }
  0x23   : > { %s616_s29 = scalar_select %p615_p13, %s5486_s21, 1 }
  0x24   : > { %s4843_s14 = sshll.u32 %s5666_s27, 6  ;;  %s6227_s3 = sld [smem:[#allocation12_spill]] }
  0x25   : > { %s5676_s26 = scalar_lea.vmem %s6223_s1, %s4843_s14  ;;  %s5684_s24 = sshll.u32 %s616_s29, 3 }
  0x26   : > { %v655_v1 = vld [vmem:[%s5676_s26] sm:$0xff]  ;;  %v656_v2 = vld [vmem:[%s5676_s26 + $0x8] sm:$0xff]  ;;  %s618_s30 = scalar_lea.vmem %s6224_s2, %s5684_s24  ;;  %v657_v3 = vld [vmem:[%s5676_s26 + $0x10] sm:$0xff]  ;;  %s4844_s14 = sshll.u32 %s5666_s27, 4 }
  0x27   : > { %5002 = vmatpush3.msra.mxu0 %v655_v1  ;;  %5007 = vmatpush3.msra.mxu1 %v656_v2  ;;  %v663_v4 = vld [vmem:[%s618_s30] sm:$0xff]  ;;  %v658_v5 = vld [vmem:[%s5676_s26 + $0x18] sm:$0xff]  ;;  %v660_v7 = vld [vmem:[%s5676_s26 + $0x28] sm:$0xff]  ;;  %s5780_s1 = scalar_lea.vmem %s6226_s4, %s4844_s14  ;;  %s627_s14 = scalar_lea.vmem %s6197_s5, %s5684_s24 }
  0x28   : > { %5011 = vmatprep.subr.mxu0 %v5504_v0  ;;  %5016 = vmatprep.subr.mxu1 %v5504_v0  ;;  %v659_v6 = vld [vmem:[%s5676_s26 + $0x20] sm:$0xff]  ;;  %v661_v8 = vld [vmem:[%s5676_s26 + $0x30] sm:$0xff]  ;;  %v662_v9 = vld [vmem:[%s5676_s26 + $0x38] sm:$0xff]  ;;  %s4845_s26 = sshll.u32 %s5666_s27, 2  ;;  %s4688_s2 = sshll.u32 %s5486_s21, 3 }
  0x29   : > { %5004 = vmatmul.mubr.msk.f32.vlgmr.msra.gmra.mrb[0].mxu0 %vm666_vm1, %v663_v4  ;;  %5009 = vmatmul.mubr.msk.f32.vlgmr.msra.gmra.mrb[0].mxu1 %vm666_vm1, %v663_v4  ;;  %s632_s29 = scalar_lea.vmem %s6199_s7, %s4845_s26  ;;  %p602_p0 = scmp.lt.s32.totalorder %s4688_s2, 15 }
  0x2a   : > { %5012 = vmatpush3.msra.mxu0 %v657_v3  ;;  %5013 = vmatprep.mubr.msk.f32.mxu0 %vm5505_vm0, %v5504_v0  ;;  %s4690_s26 = sshll.u32 %s5666_s27, 5  ;;  %s4846_s27 = sshll.u32 %s5486_s21, 4 }
  0x2b   : > { %5017 = vmatpush3.msra.mxu1 %v658_v5  ;;  %5018 = vmatprep.mubr.msk.f32.mxu1 %vm5505_vm0, %v5504_v0  ;;  %s6244_s2 = smov (!%p602_p0, %s4688_s2), 15 }
  0x2c   : > { %5021 = vmatprep.subr.mxu0 %v5504_v0  ;;  %5026 = vmatprep.subr.mxu1 %v5504_v0 }
  0x2d   : > { %5014 = vmatmul.mubr.msk.f32.vlgmr.msra.gmra.mrb[2].mxu0 %vm666_vm1, %v663_v4  ;;  %5019 = vmatmul.mubr.msk.f32.vlgmr.msra.gmra.mrb[2].mxu1 %vm666_vm1, %v663_v4 }
  0x2e   : > { %5022 = vmatpush3.msra.mxu0 %v659_v6  ;;  %5023 = vmatprep.mubr.msk.f32.mxu0 %vm5505_vm0, %v5504_v0 }
  0x2f   : > { %5027 = vmatpush3.msra.mxu1 %v660_v7  ;;  %5028 = vmatprep.mubr.msk.f32.mxu1 %vm5505_vm0, %v5504_v0 }
  0x30   : > { %5031 = vmatprep.subr.mxu0 %v5504_v0  ;;  %5036 = vmatprep.subr.mxu1 %v5504_v0 }
  0x31   : > { %5024 = vmatmul.mubr.msk.f32.vlgmr.msra.gmra.mrb[4].mxu0 %vm666_vm1, %v663_v4  ;;  %5029 = vmatmul.mubr.msk.f32.vlgmr.msra.gmra.mrb[4].mxu1 %vm666_vm1, %v663_v4 }
  0x32   : > { %5032 = vmatpush3.msra.mxu0 %v661_v8  ;;  %5033 = vmatprep.mubr.msk.f32.mxu0 %vm5505_vm0, %v5504_v0 }
  0x33   : > { %5037 = vmatpush3.msra.mxu1 %v662_v9  ;;  %5038 = vmatprep.mubr.msk.f32.mxu1 %vm5505_vm0, %v5504_v0 }
  0x35   : > { %5034 = vmatmul.mubr.msk.f32.vlgmr.msra.gmra.mrb[6].mxu0 %vm666_vm1, %v663_v4  ;;  %5039 = vmatmul.mubr.msk.f32.vlgmr.msra.gmra.mrb[6].mxu1 %vm666_vm1, %v663_v4 }
  0x36   : > { %5043 = vmatprep.mubr.msk.f32.mxu0 %vm666_vm1, %v5723_v10  ;;  %5048 = vmatprep.mubr.msk.f32.mxu1 %vm666_vm1, %v5723_v10 }
  0xfc   : > { %v736_v16 = vpop.f32.mrb[0].mxu0  ;;  %v806_v17 = vpop.f32.mrb[0].mxu1 }
  0xfd   : > { %v5005_v18 = vpop.f32.mrb[1].mxu0  ;;  %v5010_v19 = vpop.f32.mrb[1].mxu1 }
 0x100   : > { %v876_v21 = vpop.f32.mrb[2].mxu0  ;;  %v946_v22 = vpop.f32.mrb[2].mxu1 }
 0x101   : > { %v1230_v23 = vcombine.low %v736_v16, %v876_v21  ;;  %v1231_v24 = vcombine.high %v736_v16, %v876_v21  ;;  %v1246_v25 = vcombine.low %v806_v17, %v946_v22  ;;  %v1247_v26 = vcombine.high %v806_v17, %v946_v22  ;;  %v5015_v27 = vpop.f32.mrb[3].mxu0  ;;  %v5020_v28 = vpop.f32.mrb[3].mxu1  ;;  %v1972_v16 = vld [vmem:[%s6203_s11] sm:$0xff] }
 0x102   : > { %v2364_v21 = vld [vmem:[%s5780_s1] sm:$0xf] }
 0x103   : > { %v1238_v31 = vrot.slane %v1230_v23, %v5729_v20  ;;  %v1245_v32 = vrot.slane %v1231_v24, %v5729_v20  ;;  %v1254_v33 = vrot.slane %v1246_v25, %v5729_v20  ;;  %v1261_v34 = vrot.slane %v1247_v26, %v5729_v20 }
 0x104   : > { %v1016_v35 = vpop.f32.mrb[4].mxu0  ;;  %v1086_v36 = vpop.f32.mrb[4].mxu1 }
 0x105   : > { %v1294_v37 = vcombine.low %v1238_v31, %v1254_v33  ;;  %v1295_v38 = vcombine.high %v1238_v31, %v1254_v33  ;;  %v1310_v39 = vcombine.low %v1245_v32, %v1261_v34  ;;  %v1311_v40 = vcombine.high %v1245_v32, %v1261_v34  ;;  %v5025_v41 = vpop.f32.mrb[5].mxu0  ;;  %v5030_v42 = vpop.f32.mrb[5].mxu1  ;;  %v2368_v34 = vld [vmem:[%s627_s14] sm:$0xff] }
 0x106   : > { %v654_v41 = vld [vmem:[%s6202_s10] sm:$0xf] }
 0x107   : > { %v1302_v61 = vrot.slane %v1294_v37, %v5735_v52  ;;  %v1309_v62 = vrot.slane %v1295_v38, %v5735_v52  ;;  %v1318_v4 = vrot.slane %v1310_v39, %v5735_v52  ;;  %v1325_v5 = vrot.slane %v1311_v40, %v5735_v52  ;;  %v2367_v37 = vld [vmem:[%s5780_s1 + $0xc] sm:$0xf]  ;;  %v3380_v38 = vld [vmem:[%s632_s29] sm:$0x3]  ;;  %v3381_v40 = vld [vmem:[%s632_s29 + $0x2] sm:$0x3] }
 0x108   : > { %v1156_v44 = vpop.f32.mrb[6].mxu0  ;;  %v1226_v45 = vpop.f32.mrb[6].mxu1 }
 0x109   : > { %v1262_v46 = vcombine.low %v1016_v35, %v1156_v44  ;;  %v1263_v47 = vcombine.high %v1016_v35, %v1156_v44  ;;  %v1278_v48 = vcombine.low %v1086_v36, %v1226_v45  ;;  %v1279_v49 = vcombine.high %v1086_v36, %v1226_v45  ;;  %v5035_v50 = vpop.f32.mrb[7].mxu0  ;;  %v5040_v51 = vpop.f32.mrb[7].mxu1  ;;  %v2365_v35 = vld [vmem:[%s5780_s1 + $0x4] sm:$0xf]  ;;  %v2366_v36 = vld [vmem:[%s5780_s1 + $0x8] sm:$0xf]  ;;  %s636_s1 = scalar_lea.vmem %s6200_s8, %s5684_s24 }
 0x10a   : > { %v3382_v39 = vld [vmem:[%s636_s1] sm:$0xff]  ;;  %s4689_s24 = sshll.u32 %s6244_s2, 1  ;;  %s4839_s2 = sshll.u32 %s5490_s22, 5 }
 0x10b   : > { %v1270_v53 = vrot.slane %v1262_v46, %v5729_v20  ;;  %v1277_v54 = vrot.slane %v1263_v47, %v5729_v20  ;;  %v1286_v55 = vrot.slane %v1278_v48, %v5729_v20  ;;  %v1293_v56 = vrot.slane %v1279_v49, %v5729_v20  ;;  %s606_s15 = sadd.s32 %s4690_s26, %s4689_s24  ;;  %s4522_s24 = sadd.s32 %s4846_s27, %s4839_s2 }
 0x10c   : > { %s4691_s30 = sshll.u32 %s606_s15, 3  ;;  %s4840_s26 = sshll.u32 %s4522_s24, 7 }
 0x10d   : > { %v1326_v57 = vcombine.low %v1270_v53, %v1286_v55  ;;  %v1327_v58 = vcombine.high %v1270_v53, %v1286_v55  ;;  %v1342_v59 = vcombine.low %v1277_v54, %v1293_v56  ;;  %v1343_v60 = vcombine.high %v1277_v54, %v1293_v56  ;;  %s5848_s29 = scalar_lea.vmem %s6192_s0, %s4691_s30  ;;  %s596_s30 = sand.u32 1, %s5478_s19  }
 0x10e   : > { %v638_v42 = vld [vmem:[%s5848_s29] sm:$0xff]  ;;  %v639_v43 = vld [vmem:[%s5848_s29 + $0x8] sm:$0xff]  ;;  %v640_v44 = vld [vmem:[%s5848_s29 + $0x10] sm:$0xff]  ;;  %s4687_s14 = sshll.u32 %s596_s30, 7  ;;  %s5508_s27 = smov [#allocation2]  }
 0x10f   : > { %v1334_v63 = vrot.slane %v1326_v57, %v5735_v52  ;;  %v1341_v1 = vrot.slane %v1327_v58, %v5735_v52  ;;  %v1350_v2 = vrot.slane %v1342_v59, %v5735_v52  ;;  %v1357_v3 = vrot.slane %v1343_v60, %v5735_v52  ;;  %v641_v45 = vld [vmem:[%s5848_s29 + $0x18] sm:$0xff]  ;;  %v642_v46 = vld [vmem:[%s5848_s29 + $0x20] sm:$0xff]  ;;  %v643_v47 = vld [vmem:[%s5848_s29 + $0x28] sm:$0xff]  ;;  %s6110_s4 = scalar_lea.vmem [#allocation2], %s4687_s14  ;;  %s6228_s14 = sld [smem:[#allocation13_spill]] }
 0x110   : > { %v644_v48 = vld [vmem:[%s5848_s29 + $0x30] sm:$0xff]  ;;  %v645_v49 = vld [vmem:[%s5848_s29 + $0x38] sm:$0xff]  ;;  %v646_v50 = vld [vmem:[%s5848_s29 + $0x40] sm:$0xff]  ;;  %s4525_s15 = sshll.u32 %s6110_s4, 4  ;;  %s5412_s2 = sshll.u32 %s5508_s27, 4  ;;  %s6134_s15 = int_to_ptr.vmem [resolvable:$true] %s4525_s15  ;;  %s5413_s2 = int_to_ptr.vmem [resolvable:$false] %s5412_s2 }
 0x111   : > { %v1358_v6 = vcombine.low %v1302_v61, %v1334_v63  ;;  %v1359_v7 = vcombine.high %v1302_v61, %v1334_v63  ;;  %v1360_v8 = vcombine.low %v1309_v62, %v1341_v1  ;;  %v1361_v9 = vcombine.high %v1309_v62, %v1341_v1  ;;  %v647_v51 = vld [vmem:[%s5848_s29 + $0x48] sm:$0xff]  ;;  %v648_v53 = vld [vmem:[%s5848_s29 + $0x50] sm:$0xff]  ;;  %v649_v54 = vld [vmem:[%s5848_s29 + $0x58] sm:$0xff]  ;;  %s5414_s24 = scalar_lea.vmem %s5413_s2, 4096  ;;  %p5415_p5 = scmp.lt.s32.totalorder %s6134_s15, %s5413_s2 }
 0x112   : > { %v1362_v12 = vcombine.low %v1318_v4, %v1350_v2  ;;  %v1363_v13 = vcombine.high %v1318_v4, %v1350_v2  ;;  %v1364_v14 = vcombine.low %v1325_v5, %v1357_v3  ;;  %v1365_v15 = vcombine.high %v1325_v5, %v1357_v3  ;;  %v650_v55 = vld [vmem:[%s5848_s29 + $0x60] sm:$0xff]  ;;  %v651_v56 = vld [vmem:[%s5848_s29 + $0x68] sm:$0xff]  ;;  %v652_v57 = vld [vmem:[%s5848_s29 + $0x70] sm:$0xff] }
 0x113   : > { %5041 = vmatprep.subr.mxu0 %v1358_v6  ;;  %5046 = vmatprep.subr.mxu1 %v1359_v7  ;;  %v653_v58 = vld [vmem:[%s5848_s29 + $0x78] sm:$0xff]  ;;  %v5890_v59 = vld [vmem:[%s6198_s6] sm:$0xff]  ;;  %s6140_s29 = scalar_lea.sflag [#allocation3], %s596_s30 }
 0x114   : > { %5042 = vmatpush3.msra.mxu0 %v1358_v6  ;;  %5047 = vmatpush3.msra.mxu1 %v1359_v7 }
 0x115   : > { %5044 = vmatmul.mubr.msk.f32.vlgmr.msra.gmra.mrb[8].mxu0 %vm666_vm1, %v665_v11  ;;  %5049 = vmatmul.mubr.msk.f32.vlgmr.msra.gmra.mrb[8].mxu1 %vm666_vm1, %v665_v11  ;;  %s6132_s1 = scalar_lea.hbm %s6228_s14, %s4840_s26 }
 0x116   : > { %5051 = vmatprep.subr.mxu0 %v1360_v8  ;;  %5056 = vmatprep.subr.mxu1 %v1361_v9 }
 0x117   : > { %5052 = vmatpush3.msra.mxu0 %v1360_v8  ;;  %5057 = vmatpush3.msra.mxu1 %v1361_v9 }
 0x118   : > { %5061 = vmatprep.subr.mxu0 %v1362_v12  ;;  %5066 = vmatprep.subr.mxu1 %v1363_v13 }
 0x119   : > { %5053 = vmatprep.mubr.msk.f32.mxu0 %vm666_vm1, %v5723_v10  ;;  %5058 = vmatprep.mubr.msk.f32.mxu1 %vm666_vm1, %v5723_v10 }
 0x11a   : > { %5054 = vmatmul.mubr.msk.f32.vlgmr.msra.gmra.mrb[10].mxu0 %vm666_vm1, %v665_v11  ;;  %5059 = vmatmul.mubr.msk.f32.vlgmr.msra.gmra.mrb[10].mxu1 %vm666_vm1, %v665_v11 }
 0x11b   : > { %5062 = vmatpush3.msra.mxu0 %v1362_v12  ;;  %5067 = vmatpush3.msra.mxu1 %v1363_v13 }
 0x11c   : > { %5071 = vmatprep.subr.mxu0 %v1364_v14  ;;  %5076 = vmatprep.subr.mxu1 %v1365_v15 }
 0x11d   : > { %5063 = vmatprep.mubr.msk.f32.mxu0 %vm666_vm1, %v5723_v10  ;;  %5068 = vmatprep.mubr.msk.f32.mxu1 %vm666_vm1, %v5723_v10 }
 0x11e   : > { %5064 = vmatmul.mubr.msk.f32.vlgmr.msra.gmra.mrb[12].mxu0 %vm666_vm1, %v665_v11  ;;  %5069 = vmatmul.mubr.msk.f32.vlgmr.msra.gmra.mrb[12].mxu1 %vm666_vm1, %v665_v11 }
 0x11f   : > { %5072 = vmatpush3.msra.mxu0 %v1364_v14  ;;  %5077 = vmatpush3.msra.mxu1 %v1365_v15 }
 0x120   : > { %5073 = vmatprep.mubr.msk.f32.mxu0 %vm666_vm1, %v5723_v10  ;;  %5078 = vmatprep.mubr.msk.f32.mxu1 %vm666_vm1, %v5723_v10 }
 0x121   : > { %5081 = vmatprep.subr.mxu1 %v1972_v16  ;;  %5107 = vmatprep.subr.msk.mxu0 %vm2215_vm2, %v654_v41 }
 0x122   : > { %5074 = vmatmul.mubr.msk.f32.vlgmr.msra.gmra.mrb[14].mxu0 %vm666_vm1, %v665_v11  ;;  %5079 = vmatmul.mubr.msk.f32.vlgmr.msra.gmra.mrb[14].mxu1 %vm666_vm1, %v665_v11 }
 0x123   : > { %5082 = vmatpush3.msra.mxu1 %v1972_v16  ;;  %5109 = vmatprep.mubr.msk.f32.mxu0 %vm2166_vm3, %v638_v42 }
 0x124   : > { %5133 = vmatprep.subr.mxu1 %v5504_v0  ;;  %5108 = vmatpush3.msk.msra.mxu0 %vm2215_vm2, %v654_v41 }
 0x126   : > { %5110 = vmatmul.mubr.msk.f32.vlgmr.msra.gmra.mrb[16].mxu0 %vm2166_vm3, %v639_v43 }
 0x127   : > { %5112 = vmatprep.mubr.msk.f32.mxu0 %vm2166_vm3, %v640_v44 }
 0x12a   : > { %5113 = vmatmul.mubr.msk.f32.gmra.mrb[18].mxu0 %vm2166_vm3, %v641_v45 }
 0x12b   : > { %5115 = vmatprep.mubr.msk.f32.mxu0 %vm2166_vm3, %v642_v46 }
 0x12e   : > { %5116 = vmatmul.mubr.msk.f32.gmra.mrb[20].mxu0 %vm2166_vm3, %v643_v47 }
 0x12f   : > { %5118 = vmatprep.mubr.msk.f32.mxu0 %vm2166_vm3, %v644_v48 }
 0x132   : > { %5119 = vmatmul.mubr.msk.f32.gmra.mrb[22].mxu0 %vm2166_vm3, %v645_v49 }
 0x133   : > { %5121 = vmatprep.mubr.msk.f32.mxu0 %vm2166_vm3, %v646_v50 }
 0x136   : > { %5122 = vmatmul.mubr.msk.f32.gmra.mrb[24].mxu0 %vm2166_vm3, %v647_v51 }
 0x137   : > { %5124 = vmatprep.mubr.msk.f32.mxu0 %vm2166_vm3, %v648_v53 }
 0x13a   : > { %5125 = vmatmul.mubr.msk.f32.gmra.mrb[26].mxu0 %vm2166_vm3, %v649_v54 }
 0x13b   : > { %5127 = vmatprep.mubr.msk.f32.mxu0 %vm2166_vm3, %v650_v55 }
 0x13e   : > { %5128 = vmatmul.mubr.msk.f32.gmra.mrb[28].mxu0 %vm2166_vm3, %v651_v56 }
 0x13f   : > { %5130 = vmatprep.mubr.msk.f32.mxu0 %vm2166_vm3, %v652_v57 }
 0x142   : > { %5131 = vmatmul.mubr.msk.f32.gmra.mrb[30].mxu0 %vm2166_vm3, %v653_v58  ;;  %v3383_v58 = vld [vmem:[%s6201_s9] sm:$0xff] }
 0x143   : > { %5155 = vmatprep.mubr.msk.f32.mxu0 %vm2166_vm3, %v5890_v59 }
 0x1e8   : > { %v5045_v10 = vpop.f32.mrb[8].mxu0  ;;  %v5050_v17 = vpop.f32.mrb[8].mxu1 }
 0x1e9   : > { %v1438_v18 = vpop.f32.mrb[9].mxu0  ;;  %v1513_v19 = vpop.f32.mrb[9].mxu1 }
 0x1ea   : > { %5083 = vmatprep.mubr.msk.f32.mxu1 %vm666_vm1, %v1438_v18 }
 0x1eb   : > { %5084 = vmatmul.mubr.msk.f32.vlgmr.msra.gmra.mrb[16].mxu1 %vm666_vm1, %v5045_v10 }
 0x1ec   : > { %5086 = vmatprep.mubr.msk.f32.mxu1 %vm666_vm1, %v1513_v19  ;;  %5134 = vmatpush3.msk.msra.mxu1 %vm2215_vm2, %v2364_v21 }
 0x1ed   : > { %v5055_v22 = vpop.f32.mrb[10].mxu0  ;;  %v5060_v23 = vpop.f32.mrb[10].mxu1  ;;  %5138 = vmatprep.subr.mxu1 %v5504_v0 }
 0x1ee   : > { %v1588_v24 = vpop.f32.mrb[11].mxu0  ;;  %v1663_v25 = vpop.f32.mrb[11].mxu1 }
 0x1ef   : > { %5087 = vmatmul.mubr.msk.f32.gmra.mrb[18].mxu1 %vm666_vm1, %v5050_v17 }
 0x1f0   : > { %5089 = vmatprep.mubr.msk.f32.mxu1 %vm666_vm1, %v1588_v24 }
 0x1f1   : > { %v5065_v26 = vpop.f32.mrb[12].mxu0  ;;  %v5070_v27 = vpop.f32.mrb[12].mxu1 }
 0x1f2   : > { %v1738_v28 = vpop.f32.mrb[13].mxu0  ;;  %v1813_v29 = vpop.f32.mrb[13].mxu1 }
 0x1f3   : > { %5090 = vmatmul.mubr.msk.f32.gmra.mrb[20].mxu1 %vm666_vm1, %v5055_v22 }
 0x1f4   : > { %5092 = vmatprep.mubr.msk.f32.mxu1 %vm666_vm1, %v1663_v25 }
 0x1f5   : > { %v5075_v30 = vpop.f32.mrb[14].mxu0  ;;  %v5080_v31 = vpop.f32.mrb[14].mxu1 }
 0x1f6   : > { %v1888_v32 = vpop.f32.mrb[15].mxu0  ;;  %v1963_v33 = vpop.f32.mrb[15].mxu1 }
 0x1f7   : > { %5093 = vmatmul.mubr.msk.f32.gmra.mrb[22].mxu1 %vm666_vm1, %v5060_v23 }
 0x1f8   : > { %5095 = vmatprep.mubr.msk.f32.mxu1 %vm666_vm1, %v1738_v28 }
 0x1fb   : > { %5096 = vmatmul.mubr.msk.f32.gmra.mrb[24].mxu1 %vm666_vm1, %v5065_v26 }
 0x1fc   : > { %5098 = vmatprep.mubr.msk.f32.mxu1 %vm666_vm1, %v1813_v29 }
 0x1ff   : > { %5099 = vmatmul.mubr.msk.f32.gmra.mrb[26].mxu1 %vm666_vm1, %v5070_v27 }
 0x200   : > { %5101 = vmatprep.mubr.msk.f32.mxu1 %vm666_vm1, %v1888_v32 }
 0x203   : > { %5102 = vmatmul.mubr.msk.f32.gmra.mrb[28].mxu1 %vm666_vm1, %v5075_v30 }
 0x204   : > { %5104 = vmatprep.mubr.msk.f32.mxu1 %vm666_vm1, %v1963_v33 }
 0x207   : > { %5105 = vmatmul.mubr.msk.f32.gmra.mrb[30].mxu1 %vm666_vm1, %v5080_v31 }
 0x208   : > { %5135 = vmatprep.mubr.msk.f32.mxu1 %vm5505_vm0, %v5504_v0 }
 0x20b   : > { %5136 = vmatmul.mubr.msk.f32.vlgmr.msra.gmra.mrb[32].mxu1 %vm2166_vm3, %v2368_v34 }
 0x20c   : > { %5139 = vmatpush3.msk.msra.mxu1 %vm2215_vm2, %v2365_v35  ;;  %5140 = vmatprep.mubr.msk.f32.mxu1 %vm5505_vm0, %v5504_v0 }
 0x20d   : > { %5143 = vmatprep.subr.mxu1 %v5504_v0 }
 0x20f   : > { %5141 = vmatmul.mubr.msk.f32.vlgmr.msra.gmra.mrb[34].mxu1 %vm2166_vm3, %v2368_v34 }
 0x210   : > { %5144 = vmatpush3.msk.msra.mxu1 %vm2215_vm2, %v2366_v36  ;;  %5145 = vmatprep.mubr.msk.f32.mxu1 %vm5505_vm0, %v5504_v0 }
 0x211   : > { %5148 = vmatprep.subr.mxu1 %v5504_v0 }
 0x213   : > { %5146 = vmatmul.mubr.msk.f32.vlgmr.msra.gmra.mrb[36].mxu1 %vm2166_vm3, %v2368_v34 }
 0x214   : > { %5149 = vmatpush3.msk.msra.mxu1 %vm2215_vm2, %v2367_v37  ;;  %5150 = vmatprep.mubr.msk.f32.mxu1 %vm5505_vm0, %v5504_v0 }
 0x215   : > { %5193 = vmatprep.subr.mxu1 %v5504_v0 }
 0x217   : > { %5151 = vmatmul.mubr.msk.f32.vlgmr.msra.gmra.mrb[38].mxu1 %vm2166_vm3, %v2368_v34 }
 0x218   : > { %5194 = vmatpush3.msk.msra.mxu1 %vm3389_vm4, %v3380_v38  ;;  %5195 = vmatprep.mubr.msk.f32.mxu1 %vm5505_vm0, %v5504_v0  ;;  %v2370_v38 = vld [vmem:[%s6198_s6 + $0x8] sm:$0xff] }
 0x219   : > { %5198 = vmatprep.subr.mxu1 %v5504_v0 }
 0x21b   : > { %5196 = vmatmul.mubr.msk.f32.vlgmr.msra.gmra.mrb[40].mxu1 %vm3385_vm5, %v3382_v39 }
 0x21c   : > { %5199 = vmatpush3.msk.msra.mxu1 %vm3389_vm4, %v3381_v40  ;;  %5200 = vmatprep.mubr.msk.f32.mxu1 %vm5505_vm0, %v5504_v0 }
 0x21f   : > { %5201 = vmatmul.mubr.msk.f32.vlgmr.msra.gmra.mrb[42].mxu1 %vm3385_vm5, %v3382_v39 }
 0x2be   : > { %v5894_v60 = vpop.f32.mrb[16].mxu1 }
 0x2bf   : > { %v5896_v61 = vpop.f32.mrb[17].mxu1 }
 0x2c2   : > { %v5898_v62 = vpop.f32.mrb[18].mxu1 }
 0x2c3   : > { %v5900_v63 = vpop.f32.mrb[19].mxu1 }
 0x2c6   : > { %v5902_v1 = vpop.f32.mrb[20].mxu1 }
 0x2c7   : > { %v5904_v2 = vpop.f32.mrb[21].mxu1 }
 0x2ca   : > { %v5906_v3 = vpop.f32.mrb[22].mxu1 }
 0x2cb   : > { %v5908_v4 = vpop.f32.mrb[23].mxu1 }
 0x2ce   : > { %v5910_v5 = vpop.f32.mrb[24].mxu1 }
 0x2cf   : > { %v5912_v6 = vpop.f32.mrb[25].mxu1 }
 0x2d2   : > { %v5914_v7 = vpop.f32.mrb[26].mxu1 }
 0x2d3   : > { %v5916_v8 = vpop.f32.mrb[27].mxu1 }
 0x2d6   : > { %v5918_v9 = vpop.f32.mrb[28].mxu1 }
 0x2d7   : > { %v5920_v11 = vpop.f32.mrb[29].mxu1 }
 0x2da   : > { %v5922_v12 = vpop.f32.mrb[30].mxu1 }
 0x2db   : > { %v5924_v13 = vpop.f32.mrb[31].mxu1 }
 0x2de   : > { %v2443_v14 = vpop.f32.mrb[32].mxu1 }
 0x2df   : > { %v5137_v15 = vpop.f32.mrb[33].mxu1 }
 0x2e0   : > { %v3384_v15 = vld [vmem:[%s6201_s9 + $0x8] sm:$0xff] }
 0x2e2   : > { %v2516_v16 = vpop.f32.mrb[34].mxu1 }
 0x2e3   : > { %v5142_v10 = vpop.f32.mrb[35].mxu1 }
 0x2e6   : > { %v2589_v17 = vpop.f32.mrb[36].mxu1 }
 0x2e7   : > { %v2666_v18 = vcombine.low %v2443_v14, %v2589_v17  ;;  %v2667_v19 = vcombine.high %v2443_v14, %v2589_v17  ;;  %v5147_v21 = vpop.f32.mrb[37].mxu1 }
 0x2e9   : > { %v2674_v26 = vrot.slane %v2666_v18, %v5729_v20  ;;  %v2681_v27 = vrot.slane %v2667_v19, %v5729_v20 }
 0x2ea   : > { %v2662_v22 = vpop.f32.mrb[38].mxu1 }
 0x2eb   : > { %v2682_v23 = vcombine.low %v2516_v16, %v2662_v22  ;;  %v2683_v24 = vcombine.high %v2516_v16, %v2662_v22  ;;  %v5152_v25 = vpop.f32.mrb[39].mxu1  ;;  %v4289_v22 = vld [vmem:[%s6205_s13 + $0x10] sm:$0xff] }
 0x2ed   : > { %v2690_v28 = vrot.slane %v2682_v23, %v5729_v20  ;;  %v2697_v29 = vrot.slane %v2683_v24, %v5729_v20  ;;  %v4290_v23 = vld [vmem:[%s6205_s13 + $0x18] sm:$0xff] }
 0x2ee   : > { %v3459_v30 = vpop.f32.mrb[40].mxu1  ;;  %v5279_v24 = vpack.c.bf16 %v4290_v23, %v4289_v22 }
 0x2ef   : > { %v2698_v31 = vcombine.low %v2674_v26, %v2690_v28  ;;  %v2699_v32 = vcombine.high %v2674_v26, %v2690_v28  ;;  %v2714_v33 = vcombine.low %v2681_v27, %v2697_v29  ;;  %v2715_v34 = vcombine.high %v2681_v27, %v2697_v29  ;;  %v5197_v35 = vpop.f32.mrb[41].mxu1  ;;  %v6054_v26 = vld [vmem:[%s6204_s12] ss:$0 sm:$0xff] }
 0x2f0   : > { %v3536_v36 = vcombine.high %v3459_v30, %v5504_v0  ;;  %v3543_v39 = vrot.slane %v3459_v30, %v5729_v20 }
 0x2f1   : > { %v2706_v37 = vrot.slane %v2698_v31, %v5735_v52  ;;  %v2713_v46 = vrot.slane %v2699_v32, %v5735_v52  ;;  %v2729_v55 = vrot.slane %v2715_v34, %v5735_v52 }
 0x2f2   : > { %v3532_v40 = vpop.f32.mrb[42].mxu1  ;;  %v5940_v43 = vrot.slane %v3536_v36, %v5729_v20 }
 0x2f3   : > { %5153 = vmatprep.subr.msk.mxu0 %vm2215_vm2, %v2706_v37  ;;  %v2730_v41 = vcombine.high %v2706_v37, %v5504_v0  ;;  %v5202_v42 = vpop.f32.mrb[43].mxu1  ;;  %v3551_v44 = vcombine.high %v3532_v40, %v5504_v0  ;;  %v3558_v45 = vrot.slane %v3532_v40, %v5729_v20  ;;  %v2731_v53 = vcombine.high %v2713_v46, %v5504_v0 }
 0x2f4   : > { %5154 = vmatpush3.msk.msra.mxu0 %vm2215_vm2, %v2706_v37  ;;  %v2733_v56 = vcombine.high %v2729_v55, %v5504_v0 }
 0x2f5   : > { %5156 = vmatmul.mubr.msk.f32.vlgmr.msra.gmra.mrb[16].mxu0 %vm2166_vm3, %v2370_v38  ;;  %5158 = vmatprep.subr.msk.mxu0 %vm2215_vm2, %v2730_v41  ;;  %v5951_v47 = vrot.slane %v3551_v44, %v5729_v20  ;;  %v3566_v48 = vcombine.low %v3543_v39, %v3558_v45  ;;  %v3567_v49 = vcombine.high %v3543_v39, %v3558_v45 }
 0x2f6   : > { %5159 = vmatpush3.msk.msra.mxu0 %vm2215_vm2, %v2730_v41  ;;  %5160 = vmatprep.mubr.msk.f32.mxu0 %vm2166_vm3, %v5890_v59  ;;  %v2722_v20 = vrot.slane %v2714_v33, %v5735_v52 }
 0x2f7   : > { %5163 = vmatprep.subr.msk.mxu0 %vm2215_vm2, %v2713_v46  ;;  %v3582_v50 = vcombine.low %v5940_v43, %v5951_v47  ;;  %v3583_v51 = vcombine.high %v5940_v43, %v5951_v47  ;;  %v3574_v57 = vrot.slane %v3566_v48, %v5735_v52 }
 0x2f8   : > { %v2732_v54 = vcombine.high %v2722_v20, %v5504_v0 }
 0x2f9   : > { %5161 = vmatmul.mubr.msk.f32.vlgmr.msra.gmra.mrb[18].mxu0 %vm2166_vm3, %v2370_v38  ;;  %v3598_v14 = vcombine.high %v3574_v57, %v5504_v0  ;;  %v3590_v10 = vrot.slane %v3582_v50, %v5735_v52  ;;  %v3597_v18 = vrot.slane %v3583_v51, %v5735_v52 }
 0x2fa   : > { %5164 = vmatpush3.msk.msra.mxu0 %vm2215_vm2, %v2713_v46  ;;  %5165 = vmatprep.mubr.msk.f32.mxu0 %vm2166_vm3, %v5890_v59 }
 0x2fb   : > { %5168 = vmatprep.subr.msk.mxu0 %vm2215_vm2, %v2731_v53  ;;  %v3600_v17 = vcombine.high %v3590_v10, %v5504_v0  ;;  %v3601_v19 = vcombine.high %v3597_v18, %v5504_v0 }
 0x2fd   : > { %5166 = vmatmul.mubr.msk.f32.vlgmr.msra.gmra.mrb[20].mxu0 %vm2166_vm3, %v2370_v38 }
 0x2fe   : > { %5169 = vmatpush3.msk.msra.mxu0 %vm2215_vm2, %v2731_v53  ;;  %5170 = vmatprep.mubr.msk.f32.mxu0 %vm2166_vm3, %v5890_v59 }
 0x2ff   : > { %5173 = vmatprep.subr.msk.mxu0 %vm2215_vm2, %v2722_v20 }
 0x301   : > { %5171 = vmatmul.mubr.msk.f32.vlgmr.msra.gmra.mrb[22].mxu0 %vm2166_vm3, %v2370_v38 }
 0x302   : > { %5174 = vmatpush3.msk.msra.mxu0 %vm2215_vm2, %v2722_v20  ;;  %5175 = vmatprep.mubr.msk.f32.mxu0 %vm2166_vm3, %v5890_v59 }
 0x303   : > { %5178 = vmatprep.subr.msk.mxu0 %vm2215_vm2, %v2732_v54 }
 0x305   : > { %5176 = vmatmul.mubr.msk.f32.vlgmr.msra.gmra.mrb[24].mxu0 %vm2166_vm3, %v2370_v38 }
 0x306   : > { %5179 = vmatpush3.msk.msra.mxu0 %vm2215_vm2, %v2732_v54  ;;  %5180 = vmatprep.mubr.msk.f32.mxu0 %vm2166_vm3, %v5890_v59 }
 0x307   : > { %5183 = vmatprep.subr.msk.mxu0 %vm2215_vm2, %v2729_v55 }
 0x309   : > { %5181 = vmatmul.mubr.msk.f32.vlgmr.msra.gmra.mrb[26].mxu0 %vm2166_vm3, %v2370_v38 }
 0x30a   : > { %5184 = vmatpush3.msk.msra.mxu0 %vm2215_vm2, %v2729_v55  ;;  %5185 = vmatprep.mubr.msk.f32.mxu0 %vm2166_vm3, %v5890_v59 }
 0x30b   : > { %5188 = vmatprep.subr.msk.mxu0 %vm2215_vm2, %v2733_v56 }
 0x30d   : > { %5186 = vmatmul.mubr.msk.f32.vlgmr.msra.gmra.mrb[28].mxu0 %vm2166_vm3, %v2370_v38 }
 0x30e   : > { %5189 = vmatpush3.msk.msra.mxu0 %vm2215_vm2, %v2733_v56  ;;  %5190 = vmatprep.mubr.msk.f32.mxu0 %vm2166_vm3, %v5890_v59  ;;  %v3581_v59 = vrot.slane %v3567_v49, %v5735_v52  ;;  %v4287_v52 = vld [vmem:[%s6205_s13] sm:$0xff] }
 0x30f   : > { %5203 = vmatprep.subr.msk.mxu0 %vm3389_vm4, %v3574_v57 }
 0x310   : > { %v3599_v16 = vcombine.high %v3581_v59, %v5504_v0  ;;  %v4288_v0 = vld [vmem:[%s6205_s13 + $0x8] sm:$0xff] }
 0x311   : > { %5191 = vmatmul.mubr.msk.f32.vlgmr.msra.gmra.mrb[30].mxu0 %vm2166_vm3, %v2370_v38  ;;  %v5275_v21 = vpack.c.bf16 %v4288_v0, %v4287_v52 }
 0x312   : > { %5204 = vmatpush3.msk.msra.mxu0 %vm3389_vm4, %v3574_v57  ;;  %5205 = vmatprep.mubr.msk.f32.mxu0 %vm3385_vm5, %v3383_v58 }
 0x313   : > { %5208 = vmatprep.subr.msk.mxu0 %vm3389_vm4, %v3598_v14  ;;  %5276 = vmatprep.subr.bf16.mxu1 %v5275_v21 }
 0x314   : > { %5278 = vmatpush3.bf16.msra.mxu1 %v5275_v21 }
 0x315   : > { %5206 = vmatmul.mubr.msk.f32.vlgmr.msra.gmra.mrb[16].mxu0 %vm3385_vm5, %v3384_v15  ;;  %5280 = vmatprep.subr.bf16.mxu1 %v5279_v24 }
 0x316   : > { %5209 = vmatpush3.msk.msra.mxu0 %vm3389_vm4, %v3598_v14  ;;  %5210 = vmatprep.mubr.msk.f32.mxu0 %vm3385_vm5, %v3383_v58 }
 0x317   : > { %5213 = vmatprep.subr.msk.mxu0 %vm3389_vm4, %v3581_v59 }
 0x318   : > { %5282 = vmatpush3.bf16.msra.mxu1 %v5279_v24 }
 0x319   : > { %5211 = vmatmul.mubr.msk.f32.vlgmr.msra.gmra.mrb[18].mxu0 %vm3385_vm5, %v3384_v15 }
 0x31a   : > { %5214 = vmatpush3.msk.msra.mxu0 %vm3389_vm4, %v3581_v59  ;;  %5215 = vmatprep.mubr.msk.f32.mxu0 %vm3385_vm5, %v3383_v58 }
 0x31b   : > { %5218 = vmatprep.subr.msk.mxu0 %vm3389_vm4, %v3599_v16 }
 0x31d   : > { %5216 = vmatmul.mubr.msk.f32.vlgmr.msra.gmra.mrb[20].mxu0 %vm3385_vm5, %v3384_v15 }
 0x31e   : > { %5219 = vmatpush3.msk.msra.mxu0 %vm3389_vm4, %v3599_v16  ;;  %5220 = vmatprep.mubr.msk.f32.mxu0 %vm3385_vm5, %v3383_v58 }
 0x31f   : > { %5223 = vmatprep.subr.msk.mxu0 %vm3389_vm4, %v3590_v10 }
 0x321   : > { %5221 = vmatmul.mubr.msk.f32.vlgmr.msra.gmra.mrb[22].mxu0 %vm3385_vm5, %v3384_v15 }
 0x322   : > { %5224 = vmatpush3.msk.msra.mxu0 %vm3389_vm4, %v3590_v10  ;;  %5225 = vmatprep.mubr.msk.f32.mxu0 %vm3385_vm5, %v3383_v58 }
 0x323   : > { %5228 = vmatprep.subr.msk.mxu0 %vm3389_vm4, %v3600_v17 }
 0x325   : > { %5226 = vmatmul.mubr.msk.f32.vlgmr.msra.gmra.mrb[24].mxu0 %vm3385_vm5, %v3384_v15 }
 0x326   : > { %5229 = vmatpush3.msk.msra.mxu0 %vm3389_vm4, %v3600_v17  ;;  %5230 = vmatprep.mubr.msk.f32.mxu0 %vm3385_vm5, %v3383_v58 }
 0x327   : > { %5233 = vmatprep.subr.msk.mxu0 %vm3389_vm4, %v3597_v18 }
 0x329   : > { %5231 = vmatmul.mubr.msk.f32.vlgmr.msra.gmra.mrb[26].mxu0 %vm3385_vm5, %v3384_v15 }
 0x32a   : > { %5234 = vmatpush3.msk.msra.mxu0 %vm3389_vm4, %v3597_v18  ;;  %5235 = vmatprep.mubr.msk.f32.mxu0 %vm3385_vm5, %v3383_v58 }
 0x32b   : > { %5238 = vmatprep.subr.msk.mxu0 %vm3389_vm4, %v3601_v19 }
 0x32d   : > { %5236 = vmatmul.mubr.msk.f32.vlgmr.msra.gmra.mrb[28].mxu0 %vm3385_vm5, %v3384_v15 }
 0x32e   : > { %5239 = vmatpush3.msk.msra.mxu0 %vm3389_vm4, %v3601_v19  ;;  %5240 = vmatprep.mubr.msk.f32.mxu0 %vm3385_vm5, %v3383_v58 }
 0x331   : > { %5241 = vmatmul.mubr.msk.f32.vlgmr.msra.gmra.mrb[30].mxu0 %vm3385_vm5, %v3384_v15 }
 0x3e8   : > { %v5207_v25 = vpop.f32.mrb[16].mxu0 }
 0x3e9   : > { %v5283_v27 = vadd.f32 %v5207_v25, %v5894_v60  ;;  %v3677_v28 = vpop.f32.mrb[17].mxu0 }
 0x3ea   : > { %v5284_v29 = vadd.f32 %v3677_v28, %v5896_v61 }
 0x3eb   : > { %v4256_v30 = vadd.f32 %v5283_v27, %v6054_v26 }
 0x3ec   : > { %v4255_v31 = vadd.f32 %v5284_v29, %v6054_v26  ;;  %v5212_v32 = vpop.f32.mrb[18].mxu0 }
 0x3ed   : > { %v5285_v33 = vadd.f32 %v5212_v32, %v5898_v62  ;;  %v3755_v34 = vpop.f32.mrb[19].mxu0  ;;  %v4272_v37 = vmax.f32 %v4256_v30, 0.0 }
 0x3ee   : > { %v4271_v35 = vmax.f32 %v4255_v31, 0.0  ;;  %v5286_v36 = vadd.f32 %v3755_v34, %v5900_v63 }
 0x3ef   : > { %v4258_v38 = vadd.f32 %v5285_v33, %v6054_v26 }
 0x3f0   : > { %v4257_v60 = vadd.f32 %v5286_v36, %v6054_v26  ;;  %v5217_v39 = vpop.f32.mrb[20].mxu0  ;;  %5251 = vmatprep.mubr.msk.f32.mxu1 %vm4298_vm6, %v4271_v35 }
 0x3f1   : > { %v5287_v61 = vadd.f32 %v5217_v39, %v5902_v1  ;;  %v3833_v40 = vpop.f32.mrb[21].mxu0  ;;  %5252 = vmatmul.mubr.msk.f32.vlgmr.msra.gmra.mrb[44].mxu1 %vm4298_vm6, %v4272_v37  ;;  %v4274_v42 = vmax.f32 %v4258_v38, 0.0 }
 0x3f2   : > { %v4273_v41 = vmax.f32 %v4257_v60, 0.0  ;;  %v5288_v62 = vadd.f32 %v3833_v40, %v5904_v2 }
 0x3f3   : > { %v4260_v43 = vadd.f32 %v5287_v61, %v6054_v26 }
 0x3f4   : > { %v4259_v63 = vadd.f32 %v5288_v62, %v6054_v26  ;;  %v5222_v44 = vpop.f32.mrb[22].mxu0  ;;  %5254 = vmatprep.mubr.msk.f32.mxu1 %vm4298_vm6, %v4273_v41 }
 0x3f5   : > { %v5289_v45 = vadd.f32 %v5222_v44, %v5906_v3  ;;  %v3911_v46 = vpop.f32.mrb[23].mxu0  ;;  %5255 = vmatmul.mubr.msk.f32.gmra.mrb[46].mxu1 %vm4298_vm6, %v4274_v42  ;;  %v4276_v48 = vmax.f32 %v4260_v43, 0.0 }
 0x3f6   : > { %v4275_v1 = vmax.f32 %v4259_v63, 0.0  ;;  %v5290_v47 = vadd.f32 %v3911_v46, %v5908_v4 }
 0x3f7   : > { %v4262_v49 = vadd.f32 %v5289_v45, %v6054_v26 }
 0x3f8   : > { %v4261_v2 = vadd.f32 %v5290_v47, %v6054_v26  ;;  %v5227_v50 = vpop.f32.mrb[24].mxu0  ;;  %5257 = vmatprep.mubr.msk.f32.mxu1 %vm4298_vm6, %v4275_v1 }
 0x3f9   : > { %v5291_v51 = vadd.f32 %v5227_v50, %v5910_v5  ;;  %v3989_v53 = vpop.f32.mrb[25].mxu0  ;;  %5258 = vmatmul.mubr.msk.f32.gmra.mrb[48].mxu1 %vm4298_vm6, %v4276_v48  ;;  %v4278_v54 = vmax.f32 %v4262_v49, 0.0 }
 0x3fa   : > { %v4277_v3 = vmax.f32 %v4261_v2, 0.0  ;;  %v5292_v20 = vadd.f32 %v3989_v53, %v5912_v6 }
 0x3fb   : > { %v4264_v55 = vadd.f32 %v5291_v51, %v6054_v26 }
 0x3fc   : > { %v4263_v4 = vadd.f32 %v5292_v20, %v6054_v26  ;;  %v5232_v56 = vpop.f32.mrb[26].mxu0  ;;  %5260 = vmatprep.mubr.msk.f32.mxu1 %vm4298_vm6, %v4277_v3 }
 0x3fd   : > { %v5293_v57 = vadd.f32 %v5232_v56, %v5914_v7  ;;  %v4067_v58 = vpop.f32.mrb[27].mxu0  ;;  %5261 = vmatmul.mubr.msk.f32.gmra.mrb[50].mxu1 %vm4298_vm6, %v4278_v54  ;;  %v4280_v15 = vmax.f32 %v4264_v55, 0.0 }
 0x3fe   : > { %v4279_v5 = vmax.f32 %v4263_v4, 0.0  ;;  %v5294_v14 = vadd.f32 %v4067_v58, %v5916_v8 }
 0x3ff   : > { %v4266_v59 = vadd.f32 %v5293_v57, %v6054_v26 }
 0x400   : > { %v4265_v6 = vadd.f32 %v5294_v14, %v6054_v26  ;;  %v5237_v16 = vpop.f32.mrb[28].mxu0  ;;  %5263 = vmatprep.mubr.msk.f32.mxu1 %vm4298_vm6, %v4279_v5 }
 0x401   : > { %v5295_v10 = vadd.f32 %v5237_v16, %v5918_v9  ;;  %v4145_v17 = vpop.f32.mrb[29].mxu0  ;;  %5264 = vmatmul.mubr.msk.f32.gmra.mrb[52].mxu1 %vm4298_vm6, %v4280_v15  ;;  %v4282_v19 = vmax.f32 %v4266_v59, 0.0 }
 0x402   : > { %v4281_v7 = vmax.f32 %v4265_v6, 0.0  ;;  %v5296_v18 = vadd.f32 %v4145_v17, %v5920_v11 }
 0x403   : > { %v4268_v52 = vadd.f32 %v5295_v10, %v6054_v26 }
 0x404   : > { %v4267_v8 = vadd.f32 %v5296_v18, %v6054_v26  ;;  %v5242_v0 = vpop.f32.mrb[30].mxu0  ;;  %5266 = vmatprep.mubr.msk.f32.mxu1 %vm4298_vm6, %v4281_v7 }
 0x405   : > { %v5297_v21 = vadd.f32 %v5242_v0, %v5922_v12  ;;  %v4223_v22 = vpop.f32.mrb[31].mxu0  ;;  %5267 = vmatmul.mubr.msk.f32.gmra.mrb[54].mxu1 %vm4298_vm6, %v4282_v19  ;;  %v4284_v24 = vmax.f32 %v4268_v52, 0.0  ;;  %v4819_v12 = vld [vmem:[%s6227_s3] ss:$0 sm:$0xff]  ;;  %s5408_s3 = scalar_lea.vmem %s6134_s15, 2048 }
 0x406   : > { %v4283_v9 = vmax.f32 %v4267_v8, 0.0  ;;  %v5298_v23 = vadd.f32 %v4223_v22, %v5924_v13  ;;  %p5409_p1 = scmp.ne.s32.totalorder %s6134_s15, %s5408_s3  ;;  %p5416_p6 = scmp.lt.s32.totalorder %s5414_s24, %s5408_s3 }
 0x407   : > { %v4270_v11 = vadd.f32 %v5297_v21, %v6054_v26 }
 0x408   : > { %v4269_v25 = vadd.f32 %v5298_v23, %v6054_v26  ;;  %5269 = vmatprep.mubr.msk.f32.mxu1 %vm4298_vm6, %v4283_v9  ;;  %p5410_p2 = pnand %p5409_p1, %p5642_p3  ;;  %p5417_p7 = por %p5416_p6, %p5415_p5 }
 0x409   : > { %5270 = vmatmul.mubr.msk.f32.gmra.mrb[56].mxu1 %vm4298_vm6, %v4284_v24  ;;  %v4286_v28 = vmax.f32 %v4270_v11, 0.0 }
 0x40a   : > { %v4285_v27 = vmax.f32 %v4269_v25, 0.0  ;;  %p5411_p4 = pneg %p5410_p2 }
 0x40c   : > { %5272 = vmatprep.mubr.msk.f32.mxu1 %vm4298_vm6, %v4285_v27  ;;  %p5418_p9 = pnand %p5417_p7, %p5411_p4 }
 0x40d   : > { %5273 = vmatmul.mubr.msk.f32.gmra.mrb[58].mxu1 %vm4298_vm6, %v4286_v28 }
 0x4c4   : > { %v5253_v13 = vpop.f32.mrb[44].mxu1 }
 0x4c5   : > { %v4419_v29 = vadd.f32 %v5253_v13, %v4819_v12  ;;  %v4413_v26 = vpop.f32.mrb[45].mxu1 }
 0x4c6   : > { %v4414_v30 = vadd.f32 %v4819_v12, %v4413_v26 }
 0x4c7   : > { %4493 = vst [vmem:[%s6110_s4 + $0x8] sm:$0xff] %v4419_v29 }
 0x4c8   : > { %4492 = vst [vmem:[%s6110_s4] sm:$0xff] %v4414_v30  ;;  %v5256_v31 = vpop.f32.mrb[46].mxu1 }
 0x4c9   : > { %v4429_v32 = vadd.f32 %v5256_v31, %v4819_v12  ;;  %v4423_v33 = vpop.f32.mrb[47].mxu1 }
 0x4ca   : > { %v4424_v34 = vadd.f32 %v4819_v12, %v4423_v33 }
 0x4cb   : > { %4495 = vst [vmem:[%s6110_s4 + $0x18] sm:$0xff] %v4429_v32 }
 0x4cc   : > { %4494 = vst [vmem:[%s6110_s4 + $0x10] sm:$0xff] %v4424_v34  ;;  %v5259_v35 = vpop.f32.mrb[48].mxu1 }
 0x4cd   : > { %v4439_v36 = vadd.f32 %v5259_v35, %v4819_v12  ;;  %v4433_v37 = vpop.f32.mrb[49].mxu1 }
 0x4ce   : > { %v4434_v38 = vadd.f32 %v4819_v12, %v4433_v37 }
 0x4cf   : > { %4497 = vst [vmem:[%s6110_s4 + $0x28] sm:$0xff] %v4439_v36 }
 0x4d0   : > { %4496 = vst [vmem:[%s6110_s4 + $0x20] sm:$0xff] %v4434_v38  ;;  %v5262_v60 = vpop.f32.mrb[50].mxu1 }
 0x4d1   : > { %v4449_v39 = vadd.f32 %v5262_v60, %v4819_v12  ;;  %v4443_v61 = vpop.f32.mrb[51].mxu1 }
 0x4d2   : > { %v4444_v40 = vadd.f32 %v4819_v12, %v4443_v61 }
 0x4d3   : > { %4499 = vst [vmem:[%s6110_s4 + $0x38] sm:$0xff] %v4449_v39 }
 0x4d4   : > { %4498 = vst [vmem:[%s6110_s4 + $0x30] sm:$0xff] %v4444_v40  ;;  %v5265_v41 = vpop.f32.mrb[52].mxu1 }
 0x4d5   : > { %v4459_v62 = vadd.f32 %v5265_v41, %v4819_v12  ;;  %v4453_v42 = vpop.f32.mrb[53].mxu1 }
 0x4d6   : > { %v4454_v43 = vadd.f32 %v4819_v12, %v4453_v42 }
 0x4d7   : > { %4501 = vst [vmem:[%s6110_s4 + $0x48] sm:$0xff] %v4459_v62 }
 0x4d8   : > { %4500 = vst [vmem:[%s6110_s4 + $0x40] sm:$0xff] %v4454_v43  ;;  %v5268_v63 = vpop.f32.mrb[54].mxu1 }
 0x4d9   : > { %v4469_v44 = vadd.f32 %v5268_v63, %v4819_v12  ;;  %v4463_v45 = vpop.f32.mrb[55].mxu1 }
 0x4da   : > { %v4464_v46 = vadd.f32 %v4819_v12, %v4463_v45 }
 0x4db   : > { %4503 = vst [vmem:[%s6110_s4 + $0x58] sm:$0xff] %v4469_v44 }
 0x4dc   : > { %4502 = vst [vmem:[%s6110_s4 + $0x50] sm:$0xff] %v4464_v46  ;;  %v5271_v1 = vpop.f32.mrb[56].mxu1 }
 0x4dd   : > { %v4479_v47 = vadd.f32 %v5271_v1, %v4819_v12  ;;  %v4473_v48 = vpop.f32.mrb[57].mxu1 }
 0x4de   : > { %v4474_v49 = vadd.f32 %v4819_v12, %v4473_v48 }
 0x4df   : > { %4505 = vst [vmem:[%s6110_s4 + $0x68] sm:$0xff] %v4479_v47 }
 0x4e0   : > { %4504 = vst [vmem:[%s6110_s4 + $0x60] sm:$0xff] %v4474_v49  ;;  %v5274_v2 = vpop.f32.mrb[58].mxu1 }
 0x4e1   : > { %v4489_v50 = vadd.f32 %v5274_v2, %v4819_v12  ;;  %v4483_v51 = vpop.f32.mrb[59].mxu1 }
 0x4e2   : > { %v4484_v53 = vadd.f32 %v4819_v12, %v4483_v51 }
 0x4e3   : > { %4507 = vst [vmem:[%s6110_s4 + $0x78] sm:$0xff] %v4489_v50 }
 0x4e4   : > { %4506 = vst [vmem:[%s6110_s4 + $0x70] sm:$0xff] %v4484_v53 }
 0x4e5   : > { %5421 = shalt.err (!%p5418_p9)
}
 0x4e6   : > { %s5422_s30 = scalar_lea.hbm %s6132_s1, 2048  ;;  %s5426_s21 = scalar_lea.hbm %s6228_s14, 8192 }
 0x4e7   : > { %p5423_p10 = scmp.ne.s32.totalorder %s6132_s1, %s5422_s30  ;;  %p5427_p13 = scmp.lt.u32.totalorder %s6132_s1, %s6228_s14 }
 0x4e8   : > { %p5428_p0 = scmp.lt.u32.totalorder %s5426_s21, %s5422_s30  ;;  %p5430_p2 = scmp.lt.u32.totalorder %s5422_s30, %s6132_s1 }
 0x4e9   : > { %p5424_p11 = pnand %p5423_p10, %p5642_p3 }
 0x4ea   : > { %p5429_p1 = por %p5428_p0, %p5427_p13 }
 0x4eb   : > { %p5425_p12 = pneg %p5424_p11 }
 0x4ec   : > { %p5431_p4 = por %p5430_p2, %p5429_p1 }
 0x4ee   : > { %p5432_p5 = pnand %p5431_p4, %p5425_p12 }
 0x4f0   : > { %5435 = shalt.err (!%p5432_p5)
}
 0x4f1   : > { %s5509_s3 = smov 128   ;;  %s5510_s2 = smov 8  }
 0x4f2   : > { %5331 = dma.vmem_to_hbm [thread:$0]  (%p5642_p3), %s6134_s15, 2048, %s6132_s1, %s6140_s29, %s5509_s3, %s5509_s3, %s5510_s2  }
 0x4f3 PF: > { %p5337_p6 = scmp.ge.s32.totalorder %s5502_s25, 2  ;;  %s4540_s24 = sand.u32 1, %s5474_s18  }
 0x4f4   : > { %s4541_s30 = scalar_lea.sflag [#allocation3], %s4540_s24 }
 0x4f5   : > { %p5334_p7 = pnand %p5337_p6, %p5651_p8 }
 0x4f7   : > { %5469 = dma.done.wait (!%p5334_p7), %s4541_s30, 2048  }
 0x4f8   : > { %5471 = vsyncadd (!%p5334_p7), %s4541_s30, 4294965248  ;;  %s28_s25 = sadd.s32 1, %s5502_s25   ;;  %s6229_s22 = sld [smem:[#allocation5_spill]] }
 0x4f9   : > { %p25_p9 = scmp.ge.s32.totalorder %s28_s25, 6   ;;  %s6230_s16 = sld [smem:[#allocation6_spill]] }
 0x4fa   : > { %s6231_s24 = sld [smem:[#allocation7_spill]]  ;;  %s6232_s18 = smov %s5478_s19 }
 0x4fb   : > { %s6233_s19 = smov %s5482_s20  ;;  %s6234_s20 = smov %s5660_s28 }
 0x4fc   : > { %s6235_s21 = smov %s5494_s23  ;;  %27 = sbr.rel (!%p25_p9) target bundleno = 12 (0xc), region = 133 }
 0x4ff   : > { %s6236_s23 = smov %s6230_s16 }
 0x503   :  { %4546 = vsyncpa [#allocation3], 1 }
 0x504   :  { %4548 = vsyncpa [#allocation3 + $0x1], 1 }

</bundles_post_ra>
